<compile_context>
chip_gen: v5e
topology: v5e:2x2
jax: 0.10.0
libtpu: 0.0.40
codegen_flags: <defaults>
</compile_context>

<pallas_src>
import jax
import jax.numpy as jnp
import numpy as np
from jax import lax
from jax.experimental import pallas as pl
from jax.experimental.pallas import tpu as pltpu


def fused_lstm_kernel(x_ref, wih_ref, bias_ref, whh_ref, fcw_ref, fcb_ref,
                      y_ref, hs_ref):
    """Fused SingleStepRNN forward: input projection + LSTM recurrence + fc head.

    x_ref:    (B, T, I)   f32   input, batch-first (nn.LSTM(batch_first=True))
    wih_ref:  (I, 4H)     f32   W_ih^T (PyTorch gate order i, f, g, o)
    bias_ref: (1, 4H)     f32   b_ih + b_hh
    whh_ref:  (H, 4H)     bf16  W_hh^T (bf16 MXU operands, f32 accumulation)
    fcw_ref:  (H, 1)      f32   fc.weight^T
    fcb_ref:  (1, 1)      f32   fc.bias
    y_ref:    (B, T, 1)   f32   output
    hs_ref:   (B, T, H)   f32   VMEM scratch holding every hidden state
    """
    B, T, I = x_ref.shape
    H = whh_ref.shape[0]
    f32 = jnp.float32

    # ---- Input projection hoisted out of the recurrence: ONE matmul over the
    # whole sequence, computed in-kernel so zx never round-trips through HBM.
    zx = (jnp.dot(x_ref[...].reshape(B * T, I), wih_ref[...],
                  preferred_element_type=f32)
          + bias_ref[...]).reshape(B, T, 4 * H)             # (B, T, 4H), f32

    # Hoist the hidden->hidden weights (bf16) out of the loop.
    whh = whh_ref[...]                                      # (H, 4H), bf16

    h = jnp.zeros((B, H), f32)
    c = jnp.zeros((B, H), f32)

    # Fully unrolled serial recurrence (T is static and small).  Only the
    # irreducible h @ W_hh matmul stays on the serial path; bf16 operands with
    # f32 accumulation avoid the multi-pass emulated f32 MXU matmul per step.
    # TODO(synk): for large T switch to lax.fori_loop(..., unroll=4-8) and a
    #             T-grid (BlockSpec-streamed zx/hs, h/c carried in scratch);
    #             for realistic B add a leading 'parallel' batch grid axis so
    #             v7x's two TensorCores split the batch, and budget tiles
    #             against v7x's 64 MiB VMEM via vmem_limit_bytes.
    # TODO(synk): optionally pin W_hh in the MXU weight-staging registers
    #             (pltpu.matmul_push_rhs / matmul_acc_lhs / matmul_pop) to drop
    #             the per-step weight fill; measure per generation (MRF vs MRB).
    for t in range(T):
        z = zx[:, t, :] + jnp.dot(h.astype(jnp.bfloat16), whh,
                                  preferred_element_type=f32)   # (B, 4H), f32

        # Gate nonlinearities only on the elements that need them (halves EUP
        # pushes vs sigmoid+tanh over the full (B, 4H)).  PyTorch order i,f,g,o.
        s_if = jax.nn.sigmoid(z[:, 0:2 * H])        # i and f in one EUP push
        i_g = s_if[:, 0:H]
        f_g = s_if[:, H:2 * H]
        g_g = jnp.tanh(z[:, 2 * H:3 * H])
        o_g = jax.nn.sigmoid(z[:, 3 * H:4 * H])

        c = f_g * c + i_g * g_g
        h = o_g * jnp.tanh(c)
        hs_ref[:, t, :] = h                          # static index, (B, H) store

    # ---- fc head fused in-kernel: ONE matmul over all hidden states; output is
    # produced batch-first directly (no transpose, no extra HBM round trip).
    hs = hs_ref[...].reshape(B * T, H)
    y = jnp.dot(hs, fcw_ref[...], preferred_element_type=f32) + fcb_ref[...]
    y_ref[...] = y.reshape(B, T, 1)


def single_step_lstm_forward(x, params):
    """x: (B, T, I) float32, batch-first (like nn.LSTM(batch_first=True)).
    Returns fc(lstm(x)) of shape (B, T, 1), float32."""
    B, T, I = x.shape
    H = params["w_hh"].shape[1]                     # w_hh: (4H, H)
    f32 = jnp.float32

    x = x.astype(f32)
    wih_t = params["w_ih"].astype(f32).T                        # (I, 4H)
    whh_t = params["w_hh"].astype(f32).T.astype(jnp.bfloat16)   # (H, 4H), bf16
    bias = (params["b_ih"] + params["b_hh"]).astype(f32).reshape(1, 4 * H)
    fcw_t = params["fc_w"].astype(f32).T                        # (H, 1)
    fcb = params["fc_b"].astype(f32).reshape(1, 1)

    vmem = pl.BlockSpec(memory_space=pltpu.MemorySpace.VMEM)
    return pl.pallas_call(
        fused_lstm_kernel,
        out_shape=jax.ShapeDtypeStruct((B, T, 1), f32),
        in_specs=[vmem] * 6,
        out_specs=vmem,
        scratch_shapes=[pltpu.VMEM((B, T, H), f32)],
        # No grid: the recurrence is strictly sequential and the whole working
        # set (x, weights, zx, hs) is a few KB, far under VMEM on all gens.
    )(x, wih_t, bias, whh_t, fcw_t, fcb)


def reference_forward(x, params):
    """Pure-JAX f32 reference (mirrors torch.nn.LSTM(batch_first=True) + nn.Linear)."""
    H = params["w_hh"].shape[1]
    wih_T = params["w_ih"].T
    whh_T = params["w_hh"].T
    bias = params["b_ih"] + params["b_hh"]
    fcw = params["fc_w"].T
    fcb = params["fc_b"]

    def cell(carry, x_t):
        h, c = carry
        z = x_t @ wih_T + h @ whh_T + bias
        i = jax.nn.sigmoid(z[:, 0 * H:1 * H])
        f = jax.nn.sigmoid(z[:, 1 * H:2 * H])
        g = jnp.tanh(z[:, 2 * H:3 * H])
        o = jax.nn.sigmoid(z[:, 3 * H:4 * H])
        c_new = f * c + i * g
        h_new = o * jnp.tanh(c_new)
        return (h_new, c_new), h_new

    B = x.shape[0]
    h0 = jnp.zeros((B, H), jnp.float32)
    c0 = jnp.zeros((B, H), jnp.float32)
    _, hs = lax.scan(cell, (h0, c0), jnp.transpose(x, (1, 0, 2)))   # (T, B, H)
    out = jnp.transpose(hs, (1, 0, 2))                              # (B, T, H)
    return out @ fcw + fcb                                          # (B, T, 1)


def init_params(key, input_size, hidden_size):
    """Deterministic init matching PyTorch LSTM/Linear shapes:
    w_ih: (4H, I), w_hh: (4H, H), b_ih/b_hh: (4H,), fc_w: (1, H), fc_b: (1,)."""
    ks = jax.random.split(key, 6)
    k_rnn = 1.0 / np.sqrt(hidden_size)
    k_fc = 1.0 / np.sqrt(hidden_size)
    return {
        "w_ih": jax.random.uniform(ks[0], (4 * hidden_size, input_size),
                                   jnp.float32, -k_rnn, k_rnn),
        "w_hh": jax.random.uniform(ks[1], (4 * hidden_size, hidden_size),
                                   jnp.float32, -k_rnn, k_rnn),
        "b_ih": jax.random.uniform(ks[2], (4 * hidden_size,),
                                   jnp.float32, -k_rnn, k_rnn),
        "b_hh": jax.random.uniform(ks[3], (4 * hidden_size,),
                                   jnp.float32, -k_rnn, k_rnn),
        "fc_w": jax.random.uniform(ks[4], (1, hidden_size),
                                   jnp.float32, -k_fc, k_fc),
        "fc_b": jax.random.uniform(ks[5], (1,),
                                   jnp.float32, -k_fc, k_fc),
    }


if __name__ == "__main__":
    B, T, INPUT_SIZE, HIDDEN_SIZE = 2, 8, 16, 32

    key = jax.random.PRNGKey(0)
    k_x, k_p = jax.random.split(key)
    x = jax.random.normal(k_x, (B, T, INPUT_SIZE), jnp.float32)
    params = init_params(k_p, INPUT_SIZE, HIDDEN_SIZE)

    out = single_step_lstm_forward(x, params)
    out = jax.block_until_ready(out)

    ref = jax.block_until_ready(reference_forward(x, params))
    assert out.shape == (B, T, 1), out.shape
    # Tolerance loosened vs the pure-f32 reference: the recurrent h @ W_hh
    # matmul intentionally uses bf16 operands (f32 accumulation).
    np.testing.assert_allclose(np.asarray(out), np.asarray(ref),
                               rtol=1e-2, atol=1e-2)
    print("KERNEL_OK")
</pallas_src>

<mosaic_0001>
module attributes {stable_mosaic.version = 11 : i64} {
  func.func @fused_lstm_kernel(%arg0: memref<2x8x16xf32, #tpu.memory_space<vmem>>, %arg1: memref<16x128xf32, #tpu.memory_space<vmem>>, %arg2: memref<1x128xf32, #tpu.memory_space<vmem>>, %arg3: memref<32x128xbf16, #tpu.memory_space<vmem>>, %arg4: memref<32x1xf32, #tpu.memory_space<vmem>>, %arg5: memref<1x1xf32, #tpu.memory_space<vmem>>, %arg6: memref<2x8x1xf32, #tpu.memory_space<vmem>>, %arg7: memref<2x8x32xf32, #tpu.memory_space<vmem>>) attributes {dimension_semantics = [], scalar_prefetch = 0 : i64, scratch_operands = 1 : i64, tpu.core_type = #tpu.core_type<tc>} {
    %c0 = arith.constant 0 : index
    %c0_0 = arith.constant 0 : index
    %c0_1 = arith.constant 0 : index
    %0 = vector.load %arg0[%c0, %c0_0, %c0_1] : memref<2x8x16xf32, #tpu.memory_space<vmem>>, vector<2x8x16xf32>
    %1 = vector.shape_cast %0 : vector<2x8x16xf32> to vector<16x16xf32>
    %c0_2 = arith.constant 0 : index
    %c0_3 = arith.constant 0 : index
    %2 = vector.load %arg1[%c0_2, %c0_3] : memref<16x128xf32, #tpu.memory_space<vmem>>, vector<16x128xf32>
    %cst = arith.constant dense<0.000000e+00> : vector<16x128xf32>
    %3 = tpu.matmul %1, %2, %cst {dimension_numbers = #tpu.dot_dimension_numbers<[1], [0], [0], [1], [0, 0, 1, 1], [], []>} : vector<16x16xf32>, vector<16x128xf32>, vector<16x128xf32> -> vector<16x128xf32>
    %c0_4 = arith.constant 0 : index
    %c0_5 = arith.constant 0 : index
    %4 = vector.load %arg2[%c0_4, %c0_5] : memref<1x128xf32, #tpu.memory_space<vmem>>, vector<1x128xf32>
    %5 = vector.broadcast %4 : vector<1x128xf32> to vector<16x128xf32>
    %6 = arith.addf %3, %5 : vector<16x128xf32>
    %7 = vector.shape_cast %6 : vector<16x128xf32> to vector<2x8x128xf32>
    %c0_6 = arith.constant 0 : index
    %c0_7 = arith.constant 0 : index
    %8 = vector.load %arg3[%c0_6, %c0_7] : memref<32x128xbf16, #tpu.memory_space<vmem>>, vector<32x128xbf16>
    %cst_8 = arith.constant 0.000000e+00 : f32
    %9 = vector.broadcast %cst_8 : f32 to vector<2x32xf32>
    %cst_9 = arith.constant 0.000000e+00 : f32
    %10 = vector.broadcast %cst_9 : f32 to vector<2x32xf32>
    %11 = vector.extract_strided_slice %7 {offsets = [0, 0, 0], sizes = [2, 1, 128], strides = [1, 1, 1]} : vector<2x8x128xf32> to vector<2x1x128xf32>
    %12 = vector.shape_cast %11 : vector<2x1x128xf32> to vector<2x128xf32>
    %13 = arith.truncf %9 : vector<2x32xf32> to vector<2x32xbf16>
    %cst_10 = arith.constant dense<0.000000e+00> : vector<2x128xf32>
    %14 = tpu.matmul %13, %8, %cst_10 {dimension_numbers = #tpu.dot_dimension_numbers<[1], [0], [0], [1], [0, 0, 1, 1], [], []>} : vector<2x32xbf16>, vector<32x128xbf16>, vector<2x128xf32> -> vector<2x128xf32>
    %15 = arith.addf %12, %14 : vector<2x128xf32>
    %16 = vector.extract_strided_slice %15 {offsets = [0, 0], sizes = [2, 64], strides = [1, 1]} : vector<2x128xf32> to vector<2x64xf32>
    %17 = arith.negf %16 : vector<2x64xf32>
    %18 = math.exp %17 : vector<2x64xf32>
    %cst_11 = arith.constant 1.000000e+00 : f32
    %19 = vector.broadcast %cst_11 : f32 to vector<2x64xf32>
    %20 = arith.addf %19, %18 : vector<2x64xf32>
    %21 = arith.divf %19, %20 : vector<2x64xf32>
    %22 = vector.extract_strided_slice %21 {offsets = [0, 0], sizes = [2, 32], strides = [1, 1]} : vector<2x64xf32> to vector<2x32xf32>
    %23 = vector.extract_strided_slice %21 {offsets = [0, 32], sizes = [2, 32], strides = [1, 1]} : vector<2x64xf32> to vector<2x32xf32>
    %24 = vector.extract_strided_slice %15 {offsets = [0, 64], sizes = [2, 32], strides = [1, 1]} : vector<2x128xf32> to vector<2x32xf32>
    %25 = math.tanh %24 : vector<2x32xf32>
    %26 = vector.extract_strided_slice %15 {offsets = [0, 96], sizes = [2, 32], strides = [1, 1]} : vector<2x128xf32> to vector<2x32xf32>
    %27 = arith.negf %26 : vector<2x32xf32>
    %28 = math.exp %27 : vector<2x32xf32>
    %cst_12 = arith.constant 1.000000e+00 : f32
    %29 = vector.broadcast %cst_12 : f32 to vector<2x32xf32>
    %30 = arith.addf %29, %28 : vector<2x32xf32>
    %31 = arith.divf %29, %30 : vector<2x32xf32>
    %32 = arith.mulf %23, %10 : vector<2x32xf32>
    %33 = arith.mulf %22, %25 : vector<2x32xf32>
    %34 = arith.addf %32, %33 : vector<2x32xf32>
    %35 = math.tanh %34 : vector<2x32xf32>
    %36 = arith.mulf %31, %35 : vector<2x32xf32>
    %c0_13 = arith.constant 0 : index
    %c0_14 = arith.constant 0 : index
    %c0_15 = arith.constant 0 : index
    %37 = vector.load %arg7[%c0_13, %c0_14, %c0_15] : memref<2x8x32xf32, #tpu.memory_space<vmem>>, vector<2x1x32xf32>
    %38 = vector.shape_cast %37 : vector<2x1x32xf32> to vector<2x32xf32>
    %39 = vector.shape_cast %36 : vector<2x32xf32> to vector<2x1x32xf32>
    tpu.vector_store %arg7[%c0_13, %c0_14, %c0_15], %39 {strides = array<i32>} : memref<2x8x32xf32, #tpu.memory_space<vmem>>, vector<2x1x32xf32>,
    %40 = vector.extract_strided_slice %7 {offsets = [0, 1, 0], sizes = [2, 1, 128], strides = [1, 1, 1]} : vector<2x8x128xf32> to vector<2x1x128xf32>
    %41 = vector.shape_cast %40 : vector<2x1x128xf32> to vector<2x128xf32>
    %42 = arith.truncf %36 : vector<2x32xf32> to vector<2x32xbf16>
    %cst_16 = arith.constant dense<0.000000e+00> : vector<2x128xf32>
    %43 = tpu.matmul %42, %8, %cst_16 {dimension_numbers = #tpu.dot_dimension_numbers<[1], [0], [0], [1], [0, 0, 1, 1], [], []>} : vector<2x32xbf16>, vector<32x128xbf16>, vector<2x128xf32> -> vector<2x128xf32>
    %44 = arith.addf %41, %43 : vector<2x128xf32>
    %45 = vector.extract_strided_slice %44 {offsets = [0, 0], sizes = [2, 64], strides = [1, 1]} : vector<2x128xf32> to vector<2x64xf32>
    %46 = arith.negf %45 : vector<2x64xf32>
    %47 = math.exp %46 : vector<2x64xf32>
    %cst_17 = arith.constant 1.000000e+00 : f32
    %48 = vector.broadcast %cst_17 : f32 to vector<2x64xf32>
    %49 = arith.addf %48, %47 : vector<2x64xf32>
    %50 = arith.divf %48, %49 : vector<2x64xf32>
    %51 = vector.extract_strided_slice %50 {offsets = [0, 0], sizes = [2, 32], strides = [1, 1]} : vector<2x64xf32> to vector<2x32xf32>
    %52 = vector.extract_strided_slice %50 {offsets = [0, 32], sizes = [2, 32], strides = [1, 1]} : vector<2x64xf32> to vector<2x32xf32>
    %53 = vector.extract_strided_slice %44 {offsets = [0, 64], sizes = [2, 32], strides = [1, 1]} : vector<2x128xf32> to vector<2x32xf32>
    %54 = math.tanh %53 : vector<2x32xf32>
    %55 = vector.extract_strided_slice %44 {offsets = [0, 96], sizes = [2, 32], strides = [1, 1]} : vector<2x128xf32> to vector<2x32xf32>
    %56 = arith.negf %55 : vector<2x32xf32>
    %57 = math.exp %56 : vector<2x32xf32>
    %cst_18 = arith.constant 1.000000e+00 : f32
    %58 = vector.broadcast %cst_18 : f32 to vector<2x32xf32>
    %59 = arith.addf %58, %57 : vector<2x32xf32>
    %60 = arith.divf %58, %59 : vector<2x32xf32>
    %61 = arith.mulf %52, %34 : vector<2x32xf32>
    %62 = arith.mulf %51, %54 : vector<2x32xf32>
    %63 = arith.addf %61, %62 : vector<2x32xf32>
    %64 = math.tanh %63 : vector<2x32xf32>
    %65 = arith.mulf %60, %64 : vector<2x32xf32>
    %c0_19 = arith.constant 0 : index
    %c1 = arith.constant 1 : index
    %c0_20 = arith.constant 0 : index
    %66 = vector.load %arg7[%c0_19, %c1, %c0_20] : memref<2x8x32xf32, #tpu.memory_space<vmem>>, vector<2x1x32xf32>
    %67 = vector.shape_cast %66 : vector<2x1x32xf32> to vector<2x32xf32>
    %68 = vector.shape_cast %65 : vector<2x32xf32> to vector<2x1x32xf32>
    tpu.vector_store %arg7[%c0_19, %c1, %c0_20], %68 {strides = array<i32>} : memref<2x8x32xf32, #tpu.memory_space<vmem>>, vector<2x1x32xf32>,
    %69 = vector.extract_strided_slice %7 {offsets = [0, 2, 0], sizes = [2, 1, 128], strides = [1, 1, 1]} : vector<2x8x128xf32> to vector<2x1x128xf32>
    %70 = vector.shape_cast %69 : vector<2x1x128xf32> to vector<2x128xf32>
    %71 = arith.truncf %65 : vector<2x32xf32> to vector<2x32xbf16>
    %cst_21 = arith.constant dense<0.000000e+00> : vector<2x128xf32>
    %72 = tpu.matmul %71, %8, %cst_21 {dimension_numbers = #tpu.dot_dimension_numbers<[1], [0], [0], [1], [0, 0, 1, 1], [], []>} : vector<2x32xbf16>, vector<32x128xbf16>, vector<2x128xf32> -> vector<2x128xf32>
    %73 = arith.addf %70, %72 : vector<2x128xf32>
    %74 = vector.extract_strided_slice %73 {offsets = [0, 0], sizes = [2, 64], strides = [1, 1]} : vector<2x128xf32> to vector<2x64xf32>
    %75 = arith.negf %74 : vector<2x64xf32>
    %76 = math.exp %75 : vector<2x64xf32>
    %cst_22 = arith.constant 1.000000e+00 : f32
    %77 = vector.broadcast %cst_22 : f32 to vector<2x64xf32>
    %78 = arith.addf %77, %76 : vector<2x64xf32>
    %79 = arith.divf %77, %78 : vector<2x64xf32>
    %80 = vector.extract_strided_slice %79 {offsets = [0, 0], sizes = [2, 32], strides = [1, 1]} : vector<2x64xf32> to vector<2x32xf32>
    %81 = vector.extract_strided_slice %79 {offsets = [0, 32], sizes = [2, 32], strides = [1, 1]} : vector<2x64xf32> to vector<2x32xf32>
    %82 = vector.extract_strided_slice %73 {offsets = [0, 64], sizes = [2, 32], strides = [1, 1]} : vector<2x128xf32> to vector<2x32xf32>
    %83 = math.tanh %82 : vector<2x32xf32>
    %84 = vector.extract_strided_slice %73 {offsets = [0, 96], sizes = [2, 32], strides = [1, 1]} : vector<2x128xf32> to vector<2x32xf32>
    %85 = arith.negf %84 : vector<2x32xf32>
    %86 = math.exp %85 : vector<2x32xf32>
    %cst_23 = arith.constant 1.000000e+00 : f32
    %87 = vector.broadcast %cst_23 : f32 to vector<2x32xf32>
    %88 = arith.addf %87, %86 : vector<2x32xf32>
    %89 = arith.divf %87, %88 : vector<2x32xf32>
    %90 = arith.mulf %81, %63 : vector<2x32xf32>
    %91 = arith.mulf %80, %83 : vector<2x32xf32>
    %92 = arith.addf %90, %91 : vector<2x32xf32>
    %93 = math.tanh %92 : vector<2x32xf32>
    %94 = arith.mulf %89, %93 : vector<2x32xf32>
    %c0_24 = arith.constant 0 : index
    %c2 = arith.constant 2 : index
    %c0_25 = arith.constant 0 : index
    %95 = vector.load %arg7[%c0_24, %c2, %c0_25] : memref<2x8x32xf32, #tpu.memory_space<vmem>>, vector<2x1x32xf32>
    %96 = vector.shape_cast %95 : vector<2x1x32xf32> to vector<2x32xf32>
    %97 = vector.shape_cast %94 : vector<2x32xf32> to vector<2x1x32xf32>
    tpu.vector_store %arg7[%c0_24, %c2, %c0_25], %97 {strides = array<i32>} : memref<2x8x32xf32, #tpu.memory_space<vmem>>, vector<2x1x32xf32>,
    %98 = vector.extract_strided_slice %7 {offsets = [0, 3, 0], sizes = [2, 1, 128], strides = [1, 1, 1]} : vector<2x8x128xf32> to vector<2x1x128xf32>
    %99 = vector.shape_cast %98 : vector<2x1x128xf32> to vector<2x128xf32>
    %100 = arith.truncf %94 : vector<2x32xf32> to vector<2x32xbf16>
    %cst_26 = arith.constant dense<0.000000e+00> : vector<2x128xf32>
    %101 = tpu.matmul %100, %8, %cst_26 {dimension_numbers = #tpu.dot_dimension_numbers<[1], [0], [0], [1], [0, 0, 1, 1], [], []>} : vector<2x32xbf16>, vector<32x128xbf16>, vector<2x128xf32> -> vector<2x128xf32>
    %102 = arith.addf %99, %101 : vector<2x128xf32>
    %103 = vector.extract_strided_slice %102 {offsets = [0, 0], sizes = [2, 64], strides = [1, 1]} : vector<2x128xf32> to vector<2x64xf32>
    %104 = arith.negf %103 : vector<2x64xf32>
    %105 = math.exp %104 : vector<2x64xf32>
    %cst_27 = arith.constant 1.000000e+00 : f32
    %106 = vector.broadcast %cst_27 : f32 to vector<2x64xf32>
    %107 = arith.addf %106, %105 : vector<2x64xf32>
    %108 = arith.divf %106, %107 : vector<2x64xf32>
    %109 = vector.extract_strided_slice %108 {offsets = [0, 0], sizes = [2, 32], strides = [1, 1]} : vector<2x64xf32> to vector<2x32xf32>
    %110 = vector.extract_strided_slice %108 {offsets = [0, 32], sizes = [2, 32], strides = [1, 1]} : vector<2x64xf32> to vector<2x32xf32>
    %111 = vector.extract_strided_slice %102 {offsets = [0, 64], sizes = [2, 32], strides = [1, 1]} : vector<2x128xf32> to vector<2x32xf32>
    %112 = math.tanh %111 : vector<2x32xf32>
    %113 = vector.extract_strided_slice %102 {offsets = [0, 96], sizes = [2, 32], strides = [1, 1]} : vector<2x128xf32> to vector<2x32xf32>
    %114 = arith.negf %113 : vector<2x32xf32>
    %115 = math.exp %114 : vector<2x32xf32>
    %cst_28 = arith.constant 1.000000e+00 : f32
    %116 = vector.broadcast %cst_28 : f32 to vector<2x32xf32>
    %117 = arith.addf %116, %115 : vector<2x32xf32>
    %118 = arith.divf %116, %117 : vector<2x32xf32>
    %119 = arith.mulf %110, %92 : vector<2x32xf32>
    %120 = arith.mulf %109, %112 : vector<2x32xf32>
    %121 = arith.addf %119, %120 : vector<2x32xf32>
    %122 = math.tanh %121 : vector<2x32xf32>
    %123 = arith.mulf %118, %122 : vector<2x32xf32>
    %c0_29 = arith.constant 0 : index
    %c3 = arith.constant 3 : index
    %c0_30 = arith.constant 0 : index
    %124 = vector.load %arg7[%c0_29, %c3, %c0_30] : memref<2x8x32xf32, #tpu.memory_space<vmem>>, vector<2x1x32xf32>
    %125 = vector.shape_cast %124 : vector<2x1x32xf32> to vector<2x32xf32>
    %126 = vector.shape_cast %123 : vector<2x32xf32> to vector<2x1x32xf32>
    tpu.vector_store %arg7[%c0_29, %c3, %c0_30], %126 {strides = array<i32>} : memref<2x8x32xf32, #tpu.memory_space<vmem>>, vector<2x1x32xf32>,
    %127 = vector.extract_strided_slice %7 {offsets = [0, 4, 0], sizes = [2, 1, 128], strides = [1, 1, 1]} : vector<2x8x128xf32> to vector<2x1x128xf32>
    %128 = vector.shape_cast %127 : vector<2x1x128xf32> to vector<2x128xf32>
    %129 = arith.truncf %123 : vector<2x32xf32> to vector<2x32xbf16>
    %cst_31 = arith.constant dense<0.000000e+00> : vector<2x128xf32>
    %130 = tpu.matmul %129, %8, %cst_31 {dimension_numbers = #tpu.dot_dimension_numbers<[1], [0], [0], [1], [0, 0, 1, 1], [], []>} : vector<2x32xbf16>, vector<32x128xbf16>, vector<2x128xf32> -> vector<2x128xf32>
    %131 = arith.addf %128, %130 : vector<2x128xf32>
    %132 = vector.extract_strided_slice %131 {offsets = [0, 0], sizes = [2, 64], strides = [1, 1]} : vector<2x128xf32> to vector<2x64xf32>
    %133 = arith.negf %132 : vector<2x64xf32>
    %134 = math.exp %133 : vector<2x64xf32>
    %cst_32 = arith.constant 1.000000e+00 : f32
    %135 = vector.broadcast %cst_32 : f32 to vector<2x64xf32>
    %136 = arith.addf %135, %134 : vector<2x64xf32>
    %137 = arith.divf %135, %136 : vector<2x64xf32>
    %138 = vector.extract_strided_slice %137 {offsets = [0, 0], sizes = [2, 32], strides = [1, 1]} : vector<2x64xf32> to vector<2x32xf32>
    %139 = vector.extract_strided_slice %137 {offsets = [0, 32], sizes = [2, 32], strides = [1, 1]} : vector<2x64xf32> to vector<2x32xf32>
    %140 = vector.extract_strided_slice %131 {offsets = [0, 64], sizes = [2, 32], strides = [1, 1]} : vector<2x128xf32> to vector<2x32xf32>
    %141 = math.tanh %140 : vector<2x32xf32>
    %142 = vector.extract_strided_slice %131 {offsets = [0, 96], sizes = [2, 32], strides = [1, 1]} : vector<2x128xf32> to vector<2x32xf32>
    %143 = arith.negf %142 : vector<2x32xf32>
    %144 = math.exp %143 : vector<2x32xf32>
    %cst_33 = arith.constant 1.000000e+00 : f32
    %145 = vector.broadcast %cst_33 : f32 to vector<2x32xf32>
    %146 = arith.addf %145, %144 : vector<2x32xf32>
    %147 = arith.divf %145, %146 : vector<2x32xf32>
    %148 = arith.mulf %139, %121 : vector<2x32xf32>
    %149 = arith.mulf %138, %141 : vector<2x32xf32>
    %150 = arith.addf %148, %149 : vector<2x32xf32>
    %151 = math.tanh %150 : vector<2x32xf32>
    %152 = arith.mulf %147, %151 : vector<2x32xf32>
    %c0_34 = arith.constant 0 : index
    %c4 = arith.constant 4 : index
    %c0_35 = arith.constant 0 : index
    %153 = vector.load %arg7[%c0_34, %c4, %c0_35] : memref<2x8x32xf32, #tpu.memory_space<vmem>>, vector<2x1x32xf32>
    %154 = vector.shape_cast %153 : vector<2x1x32xf32> to vector<2x32xf32>
    %155 = vector.shape_cast %152 : vector<2x32xf32> to vector<2x1x32xf32>
    tpu.vector_store %arg7[%c0_34, %c4, %c0_35], %155 {strides = array<i32>} : memref<2x8x32xf32, #tpu.memory_space<vmem>>, vector<2x1x32xf32>,
    %156 = vector.extract_strided_slice %7 {offsets = [0, 5, 0], sizes = [2, 1, 128], strides = [1, 1, 1]} : vector<2x8x128xf32> to vector<2x1x128xf32>
    %157 = vector.shape_cast %156 : vector<2x1x128xf32> to vector<2x128xf32>
    %158 = arith.truncf %152 : vector<2x32xf32> to vector<2x32xbf16>
    %cst_36 = arith.constant dense<0.000000e+00> : vector<2x128xf32>
    %159 = tpu.matmul %158, %8, %cst_36 {dimension_numbers = #tpu.dot_dimension_numbers<[1], [0], [0], [1], [0, 0, 1, 1], [], []>} : vector<2x32xbf16>, vector<32x128xbf16>, vector<2x128xf32> -> vector<2x128xf32>
    %160 = arith.addf %157, %159 : vector<2x128xf32>
    %161 = vector.extract_strided_slice %160 {offsets = [0, 0], sizes = [2, 64], strides = [1, 1]} : vector<2x128xf32> to vector<2x64xf32>
    %162 = arith.negf %161 : vector<2x64xf32>
    %163 = math.exp %162 : vector<2x64xf32>
    %cst_37 = arith.constant 1.000000e+00 : f32
    %164 = vector.broadcast %cst_37 : f32 to vector<2x64xf32>
    %165 = arith.addf %164, %163 : vector<2x64xf32>
    %166 = arith.divf %164, %165 : vector<2x64xf32>
    %167 = vector.extract_strided_slice %166 {offsets = [0, 0], sizes = [2, 32], strides = [1, 1]} : vector<2x64xf32> to vector<2x32xf32>
    %168 = vector.extract_strided_slice %166 {offsets = [0, 32], sizes = [2, 32], strides = [1, 1]} : vector<2x64xf32> to vector<2x32xf32>
    %169 = vector.extract_strided_slice %160 {offsets = [0, 64], sizes = [2, 32], strides = [1, 1]} : vector<2x128xf32> to vector<2x32xf32>
    %170 = math.tanh %169 : vector<2x32xf32>
    %171 = vector.extract_strided_slice %160 {offsets = [0, 96], sizes = [2, 32], strides = [1, 1]} : vector<2x128xf32> to vector<2x32xf32>
    %172 = arith.negf %171 : vector<2x32xf32>
    %173 = math.exp %172 : vector<2x32xf32>
    %cst_38 = arith.constant 1.000000e+00 : f32
    %174 = vector.broadcast %cst_38 : f32 to vector<2x32xf32>
    %175 = arith.addf %174, %173 : vector<2x32xf32>
    %176 = arith.divf %174, %175 : vector<2x32xf32>
    %177 = arith.mulf %168, %150 : vector<2x32xf32>
    %178 = arith.mulf %167, %170 : vector<2x32xf32>
    %179 = arith.addf %177, %178 : vector<2x32xf32>
    %180 = math.tanh %179 : vector<2x32xf32>
    %181 = arith.mulf %176, %180 : vector<2x32xf32>
    %c0_39 = arith.constant 0 : index
    %c5 = arith.constant 5 : index
    %c0_40 = arith.constant 0 : index
    %182 = vector.load %arg7[%c0_39, %c5, %c0_40] : memref<2x8x32xf32, #tpu.memory_space<vmem>>, vector<2x1x32xf32>
    %183 = vector.shape_cast %182 : vector<2x1x32xf32> to vector<2x32xf32>
    %184 = vector.shape_cast %181 : vector<2x32xf32> to vector<2x1x32xf32>
    tpu.vector_store %arg7[%c0_39, %c5, %c0_40], %184 {strides = array<i32>} : memref<2x8x32xf32, #tpu.memory_space<vmem>>, vector<2x1x32xf32>,
    %185 = vector.extract_strided_slice %7 {offsets = [0, 6, 0], sizes = [2, 1, 128], strides = [1, 1, 1]} : vector<2x8x128xf32> to vector<2x1x128xf32>
    %186 = vector.shape_cast %185 : vector<2x1x128xf32> to vector<2x128xf32>
    %187 = arith.truncf %181 : vector<2x32xf32> to vector<2x32xbf16>
    %cst_41 = arith.constant dense<0.000000e+00> : vector<2x128xf32>
    %188 = tpu.matmul %187, %8, %cst_41 {dimension_numbers = #tpu.dot_dimension_numbers<[1], [0], [0], [1], [0, 0, 1, 1], [], []>} : vector<2x32xbf16>, vector<32x128xbf16>, vector<2x128xf32> -> vector<2x128xf32>
    %189 = arith.addf %186, %188 : vector<2x128xf32>
    %190 = vector.extract_strided_slice %189 {offsets = [0, 0], sizes = [2, 64], strides = [1, 1]} : vector<2x128xf32> to vector<2x64xf32>
    %191 = arith.negf %190 : vector<2x64xf32>
    %192 = math.exp %191 : vector<2x64xf32>
    %cst_42 = arith.constant 1.000000e+00 : f32
    %193 = vector.broadcast %cst_42 : f32 to vector<2x64xf32>
    %194 = arith.addf %193, %192 : vector<2x64xf32>
    %195 = arith.divf %193, %194 : vector<2x64xf32>
    %196 = vector.extract_strided_slice %195 {offsets = [0, 0], sizes = [2, 32], strides = [1, 1]} : vector<2x64xf32> to vector<2x32xf32>
    %197 = vector.extract_strided_slice %195 {offsets = [0, 32], sizes = [2, 32], strides = [1, 1]} : vector<2x64xf32> to vector<2x32xf32>
    %198 = vector.extract_strided_slice %189 {offsets = [0, 64], sizes = [2, 32], strides = [1, 1]} : vector<2x128xf32> to vector<2x32xf32>
    %199 = math.tanh %198 : vector<2x32xf32>
    %200 = vector.extract_strided_slice %189 {offsets = [0, 96], sizes = [2, 32], strides = [1, 1]} : vector<2x128xf32> to vector<2x32xf32>
    %201 = arith.negf %200 : vector<2x32xf32>
    %202 = math.exp %201 : vector<2x32xf32>
    %cst_43 = arith.constant 1.000000e+00 : f32
    %203 = vector.broadcast %cst_43 : f32 to vector<2x32xf32>
    %204 = arith.addf %203, %202 : vector<2x32xf32>
    %205 = arith.divf %203, %204 : vector<2x32xf32>
    %206 = arith.mulf %197, %179 : vector<2x32xf32>
    %207 = arith.mulf %196, %199 : vector<2x32xf32>
    %208 = arith.addf %206, %207 : vector<2x32xf32>
    %209 = math.tanh %208 : vector<2x32xf32>
    %210 = arith.mulf %205, %209 : vector<2x32xf32>
    %c0_44 = arith.constant 0 : index
    %c6 = arith.constant 6 : index
    %c0_45 = arith.constant 0 : index
    %211 = vector.load %arg7[%c0_44, %c6, %c0_45] : memref<2x8x32xf32, #tpu.memory_space<vmem>>, vector<2x1x32xf32>
    %212 = vector.shape_cast %211 : vector<2x1x32xf32> to vector<2x32xf32>
    %213 = vector.shape_cast %210 : vector<2x32xf32> to vector<2x1x32xf32>
    tpu.vector_store %arg7[%c0_44, %c6, %c0_45], %213 {strides = array<i32>} : memref<2x8x32xf32, #tpu.memory_space<vmem>>, vector<2x1x32xf32>,
    %214 = vector.extract_strided_slice %7 {offsets = [0, 7, 0], sizes = [2, 1, 128], strides = [1, 1, 1]} : vector<2x8x128xf32> to vector<2x1x128xf32>
    %215 = vector.shape_cast %214 : vector<2x1x128xf32> to vector<2x128xf32>
    %216 = arith.truncf %210 : vector<2x32xf32> to vector<2x32xbf16>
    %cst_46 = arith.constant dense<0.000000e+00> : vector<2x128xf32>
    %217 = tpu.matmul %216, %8, %cst_46 {dimension_numbers = #tpu.dot_dimension_numbers<[1], [0], [0], [1], [0, 0, 1, 1], [], []>} : vector<2x32xbf16>, vector<32x128xbf16>, vector<2x128xf32> -> vector<2x128xf32>
    %218 = arith.addf %215, %217 : vector<2x128xf32>
    %219 = vector.extract_strided_slice %218 {offsets = [0, 0], sizes = [2, 64], strides = [1, 1]} : vector<2x128xf32> to vector<2x64xf32>
    %220 = arith.negf %219 : vector<2x64xf32>
    %221 = math.exp %220 : vector<2x64xf32>
    %cst_47 = arith.constant 1.000000e+00 : f32
    %222 = vector.broadcast %cst_47 : f32 to vector<2x64xf32>
    %223 = arith.addf %222, %221 : vector<2x64xf32>
    %224 = arith.divf %222, %223 : vector<2x64xf32>
    %225 = vector.extract_strided_slice %224 {offsets = [0, 0], sizes = [2, 32], strides = [1, 1]} : vector<2x64xf32> to vector<2x32xf32>
    %226 = vector.extract_strided_slice %224 {offsets = [0, 32], sizes = [2, 32], strides = [1, 1]} : vector<2x64xf32> to vector<2x32xf32>
    %227 = vector.extract_strided_slice %218 {offsets = [0, 64], sizes = [2, 32], strides = [1, 1]} : vector<2x128xf32> to vector<2x32xf32>
    %228 = math.tanh %227 : vector<2x32xf32>
    %229 = vector.extract_strided_slice %218 {offsets = [0, 96], sizes = [2, 32], strides = [1, 1]} : vector<2x128xf32> to vector<2x32xf32>
    %230 = arith.negf %229 : vector<2x32xf32>
    %231 = math.exp %230 : vector<2x32xf32>
    %cst_48 = arith.constant 1.000000e+00 : f32
    %232 = vector.broadcast %cst_48 : f32 to vector<2x32xf32>
    %233 = arith.addf %232, %231 : vector<2x32xf32>
    %234 = arith.divf %232, %233 : vector<2x32xf32>
    %235 = arith.mulf %226, %208 : vector<2x32xf32>
    %236 = arith.mulf %225, %228 : vector<2x32xf32>
    %237 = arith.addf %235, %236 : vector<2x32xf32>
    %238 = math.tanh %237 : vector<2x32xf32>
    %239 = arith.mulf %234, %238 : vector<2x32xf32>
    %c0_49 = arith.constant 0 : index
    %c7 = arith.constant 7 : index
    %c0_50 = arith.constant 0 : index
    %240 = vector.load %arg7[%c0_49, %c7, %c0_50] : memref<2x8x32xf32, #tpu.memory_space<vmem>>, vector<2x1x32xf32>
    %241 = vector.shape_cast %240 : vector<2x1x32xf32> to vector<2x32xf32>
    %242 = vector.shape_cast %239 : vector<2x32xf32> to vector<2x1x32xf32>
    tpu.vector_store %arg7[%c0_49, %c7, %c0_50], %242 {strides = array<i32>} : memref<2x8x32xf32, #tpu.memory_space<vmem>>, vector<2x1x32xf32>,
    %c0_51 = arith.constant 0 : index
    %c0_52 = arith.constant 0 : index
    %c0_53 = arith.constant 0 : index
    %243 = vector.load %arg7[%c0_51, %c0_52, %c0_53] : memref<2x8x32xf32, #tpu.memory_space<vmem>>, vector<2x8x32xf32>
    %244 = vector.shape_cast %243 : vector<2x8x32xf32> to vector<16x32xf32>
    %c0_54 = arith.constant 0 : index
    %c0_55 = arith.constant 0 : index
    %245 = vector.load %arg4[%c0_54, %c0_55] : memref<32x1xf32, #tpu.memory_space<vmem>>, vector<32x1xf32>
    %cst_56 = arith.constant dense<0.000000e+00> : vector<16x1xf32>
    %246 = tpu.matmul %244, %245, %cst_56 {dimension_numbers = #tpu.dot_dimension_numbers<[1], [0], [0], [1], [0, 0, 1, 1], [], []>} : vector<16x32xf32>, vector<32x1xf32>, vector<16x1xf32> -> vector<16x1xf32>
    %c0_57 = arith.constant 0 : index
    %c0_58 = arith.constant 0 : index
    %247 = vector.load %arg5[%c0_57, %c0_58] : memref<1x1xf32, #tpu.memory_space<vmem>>, vector<1x1xf32>
    %248 = vector.broadcast %247 : vector<1x1xf32> to vector<16x1xf32>
    %249 = arith.addf %246, %248 : vector<16x1xf32>
    %250 = vector.shape_cast %249 : vector<16x1xf32> to vector<2x8x1xf32>
    %c0_59 = arith.constant 0 : index
    %c0_60 = arith.constant 0 : index
    %c0_61 = arith.constant 0 : index
    %251 = vector.load %arg6[%c0_59, %c0_60, %c0_61] : memref<2x8x1xf32, #tpu.memory_space<vmem>>, vector<2x8x1xf32>
    tpu.vector_store %arg6[%c0_59, %c0_60, %c0_61], %250 {strides = array<i32>} : memref<2x8x1xf32, #tpu.memory_space<vmem>>, vector<2x8x1xf32>,
    return
  }
}

</mosaic_0001>

<bundles_post_ra>
// kernel: tpu_custom_call.1
= control target key start
LH: loop header
LB: loop body
LE: loop exit
PB: predicated region body
PF: predicated region fallthrough
CT: control target
= control target key end

     0   :  { %s1666_s0 = inlined_call_operand.vmem [shape: f32[2,8,16], index: 0, kind: input, shape index: {}]   ;;  %s1667_s1 = inlined_call_operand.vmem [shape: f32[16,128], index: 1, kind: input, shape index: {}]   ;;  %s1668_s2 = inlined_call_operand.vmem [shape: f32[1,128], index: 2, kind: input, shape index: {}]   ;;  %s1669_s3 = inlined_call_operand.hbm [shape: bf16[32,128], index: 3, kind: input, shape index: {}]   ;;  %s1670_s4 = inlined_call_operand.vmem [shape: f32[32,1], index: 4, kind: input, shape index: {}]   ;;  %s1671_s5 = inlined_call_operand.<no memory space> [shape: f32[1,1], index: 5, kind: input, shape index: {}]   ;;  %s1672_s6 = inlined_call_operand.vmem [shape: f32[2,8,1], index: 6, kind: output, shape index: {}]  }
   0x1   :  { %v11_v0 = vstv %s1671_s5 }
   0x2   :  { %12 = vst [vmem:[#allocation3] sm:$0x1] %v11_v0 }
   0x3   :  { %13 = vsyncpa [#allocation5], 0  ;;  %s24_s25 = sshll.u32 %s1669_s3, 4  ;;  %s1335_s26 = smov [#allocation4]   ;;  %s25_s25 = int_to_ptr.hbm [resolvable:$true] %s24_s25 }
   0x4   :  { %s26_s27 = sshll.u32 %s1335_s26, 4  ;;  %s1336_s28 = smov 64   ;;  %s27_s27 = int_to_ptr.vmem [resolvable:$true] %s26_s27 }
   0x5   :  { %s1337_s29 = smov 4  }
   0x6   :  { %32 = dma.hbm_to_vmem [thread:$0]  %s25_s25, 256, %s27_s27, [#allocation5], %s1336_s28, %s1336_s28, %s1337_s29  }
   0x7   :  { %1333 = dma.done.wait [#allocation5], 256  }
   0x8   :  { %1334 = vsyncadd [#allocation5], 4294967040  ;;  %v45_v1 = vld [vmem:[%s1667_s1 + $0x8] sm:$0xff]  ;;  %v44_v2 = vld [vmem:[%s1667_s1] sm:$0xff]  ;;  %vm50_vm0 = vcmask 130048   ;;  %v1338_v7 = vmov 0  }
   0x9   :  { %v1167_v3 = vld [vmem:[#allocation4 + $0x8] sm:$0xff]  ;;  %1168 = vmatpush.msra.mxu3 %v45_v1  ;;  %v43_v4 = vld [vmem:[%s1666_s0 + $0x8] sm:$0xff]  ;;  %71 = vmatpush.msra.mxu0 %v45_v1  ;;  %v1166_v6 = vld [vmem:[#allocation4] sm:$0xff]  ;;  %vm211_vm9 = vcmask 1041409   ;;  %vm96_vm10 = vcmask 261120  }
   0xa   :  { %v42_v5 = vld [vmem:[%s1666_s0] sm:$0xff]  ;;  %106 = vmatpush.bf16.msra.mxu1 %v1167_v3  ;;  %225 = vmatpush.bf16.msra.mxu2 %v1167_v3 }
   0xb   :  { %1169 = vmatpush.msra.mxu3 %v44_v2  ;;  %72 = vmatpush.msra.mxu0 %v44_v2  ;;  %v1179_v8 = vld [vmem:[%s1668_s2] ss:$0 sm:$0xff]  ;;  %s1339_s2 = smov 32  }
   0xc   :  { %1132 = vmatmul.msk.f32.vlgmr.msra.gmra.mxu3 %vm50_vm0, %v43_v4  ;;  %1131 = vmatmul.msk.f32.vlgmr.msra.gmra.mxu0 %vm50_vm0, %v42_v5 }
   0xd   :  { %349 = vmatpush.bf16.msrb.mxu3 %v1167_v3  ;;  %475 = vmatpush.bf16.msrb.mxu0 %v1167_v3 }
   0xe   :  { %107 = vmatpush.bf16.msra.mxu1 %v1166_v6  ;;  %226 = vmatpush.bf16.msra.mxu2 %v1166_v6 }
  0x11   :  { %108 = vmatmul.bf16.vlgmr.msra.gmra.mxu1 %v1338_v7  ;;  %350 = vmatpush.bf16.msrb.mxu3 %v1166_v6 }
  0x12   :  { %601 = vmatpush.bf16.msrb.mxu1 %v1167_v3  ;;  %727 = vmatpush.bf16.msrb.mxu2 %v1167_v3 }
  0x13   :  { %476 = vmatpush.bf16.msrb.mxu0 %v1166_v6 }
  0x15   :  { %853 = vmatpush.bf16.msra.mxu3 %v1167_v3 }
  0x16   :  { %602 = vmatpush.bf16.msrb.mxu1 %v1166_v6  ;;  %728 = vmatpush.bf16.msrb.mxu2 %v1166_v6 }
  0x17   :  { %979 = vmatpush.bf16.msra.mxu0 %v1167_v3 }
  0x19   :  { %854 = vmatpush.bf16.msra.mxu3 %v1166_v6 }
  0x1b   :  { %980 = vmatpush.bf16.msra.mxu0 %v1166_v6 }
  0x89   :  { %v74_v13 = vpop.f32.mrf.mxu0 }
  0x8a   :  { %v1401_v15 = vadd.f32 %v1179_v8, %v74_v13 }
  0x8e   :  { %v109_v9 = vpop.f32.mrf.mxu1 }
  0x8f   :  { %v77_v10 = vpop.f32.mrf.mxu3  ;;  %v114_v11 = vrot.slane %v109_v9, 1  ;;  %v117_v17 = vadd.f32 %v109_v9, %v1401_v15 }
  0x90   :  { %v1398_v12 = vadd.f32 %v1179_v8, %v77_v10 }
  0x91   :  { %v1141_v21 = vmul.f32 -1.442695, %v117_v17 }
  0x92   :  { %v118_v14 = vadd.f32 %v114_v11, %v1398_v12 }
  0x94   :  { %1181 = vtanh.f32 %v118_v14  ;;  %v1142_v20 = vmul.f32 -1.442695, %v118_v14 }
  0x95   :  { %1183 = vtanh.f32 %v117_v17 }
  0x96   :  { %v111_v16 = vpop.f32.mrf.mxu1  ;;  %1185 = vpow2.f32 %v1142_v20 }
  0x97   :  { %1187 = vpow2.f32 %v1141_v21 }
  0x9a   :  { %v1182_v18 = vpop.eup %1181 }
  0x9b   :  { %165 = vrot.lane.b32.xlu0 %v1182_v18, %s1336_s28  ;;  %v1184_v19 = vpop.eup %1183 }
  0x9c   :  { %v1186_v22 = vpop.eup %1185 }
  0x9d   :  { %v126_v23 = vadd.f32 1.0, %v1186_v22  ;;  %v1188_v24 = vpop.eup %1187 }
  0x9e   :  { %v125_v25 = vadd.f32 1.0, %v1188_v24 }
  0x9f   :  { %1189 = vrcp.f32 %v126_v23  ;;  %v153_v34 = vand.u32 2147483648, %v126_v23  ;;  %vm147_vm2 = vweird.f32 %v126_v23  ;;  %v151_v35 = vand.u32 2147483647, %v126_v23 }
  0xa0   :  { %1191 = vrcp.f32 %v125_v25  ;;  %v138_v43 = vand.u32 2147483648, %v125_v25  ;;  %vm132_vm6 = vweird.f32 %v125_v25  ;;  %v136_v44 = vand.u32 2147483647, %v125_v25 }
  0xa1   :  { %v154_v38 = vor.u32 1.1754944e-38, %v153_v34  ;;  %vm152_vm4 = vcmp.eq.f32.partialorder %v151_v35, 8.507059e+37 }
  0xa2   :  { %v139_v46 = vor.u32 1.1754944e-38, %v138_v43  ;;  %vm137_vm8 = vcmp.eq.f32.partialorder %v136_v44, 8.507059e+37 }
  0xa3   :  { %163 = vrot.lane.b32.xlu0 %v1184_v19, %s1336_s28 }
  0xa5   :  { %v1190_v26 = vpop.eup %1189 }
  0xa6   :  { %v143_v27 = vmul.f32 %v1190_v26, %v126_v23  ;;  %v1192_v29 = vpop.eup %1191  ;;  %vm148_vm1 = vweird.f32 %v1190_v26 }
  0xa7   :  { %v128_v31 = vmul.f32 %v1192_v29, %v125_v25  ;;  %vm149_vm3 = vmor %vm147_vm2, %vm148_vm1  ;;  %vm133_vm5 = vweird.f32 %v1192_v29 }
  0xa8   :  { %v144_v28 = vsub.f32 1.0, %v143_v27  ;;  %vm134_vm7 = vmor %vm132_vm6, %vm133_vm5 }
  0xa9   :  { %v129_v33 = vsub.f32 1.0, %v128_v31 }
  0xaa   :  { %v145_v30 = vmul.f32 %v1190_v26, %v144_v28 }
  0xab   :  { %v130_v37 = vmul.f32 %v1192_v29, %v129_v33 }
  0xac   :  { %v146_v32 = vadd.f32 %v1190_v26, %v145_v30 }
  0xad   :  { %v131_v42 = vadd.f32 %v1192_v29, %v130_v37 }
  0xae   :  { %v150_v36 = vsel %vm149_vm3, %v1190_v26, %v146_v32 }
  0xaf   :  { %v155_v40 = vsel %vm152_vm4, %v154_v38, %v150_v36  ;;  %v135_v45 = vsel %vm134_vm7, %v1192_v29, %v131_v42 }
  0xb0   :  { %v140_v48 = vsel %vm137_vm8, %v139_v46, %v135_v45  ;;  %v160_v50 = vmul.f32 0.0, %v155_v40 }
  0xb1   :  { %v159_v53 = vmul.f32 0.0, %v140_v48 }
 0x10d   :  { %v166_v39 = vpop.permute.xlu0 %165 }
 0x10e   :  { %v170_v41 = vmul.f32 %v166_v39, %v155_v40 }
 0x110   :  { %175 = vrot.lane.b32.xlu1 %v170_v41, %s1339_s2 }
 0x115   :  { %v164_v47 = vpop.permute.xlu0 %163 }
 0x116   :  { %v169_v49 = vmul.f32 %v164_v47, %v140_v48 }
 0x118   :  { %173 = vrot.lane.b32.xlu1 %v169_v49, %s1339_s2 }
 0x182   :  { %v176_v51 = vpop.permute.xlu1 %175 }
 0x183   :  { %v1408_v52 = vadd.f32 %v176_v51, %v160_v50 }
 0x185   :  { %1193 = vtanh.f32 %v1408_v52  ;;  %v281_v45 = vrot.slane %v1408_v52, 7 }
 0x18a   :  { %v174_v54 = vpop.permute.xlu1 %173 }
 0x18b   :  { %v1194_v55 = vpop.eup %1193  ;;  %v1411_v56 = vadd.f32 %v174_v54, %v159_v53 }
 0x18c   :  { %187 = vrot.lane.b32.xlu2 %v1194_v55, %s1336_s28 }
 0x18d   :  { %1195 = vtanh.f32 %v1411_v56  ;;  %v280_v50 = vrot.slane %v1411_v56, 7 }
 0x193   :  { %v1196_v57 = vpop.eup %1195 }
 0x194   :  { %185 = vrot.lane.b32.xlu2 %v1196_v57, %s1336_s28 }
 0x1e6   :  { %v188_v58 = vpop.permute.xlu2 %187 }
 0x1e7   :  { %v1416_v59 = vmul.f32 %v188_v58, %v155_v40 }
 0x1e9   :  { %v205_v60 = vpack.c.bf16 %v1416_v59, %v1416_v59 }
 0x1eb   :  { %v209_v62 = vunpack.c.l.b16 %v205_v60 }
 0x1ed   :  { %v210_v1 = vrot.slane %v209_v62, 7 }
 0x1ee   :  { %v186_v61 = vpop.permute.xlu2 %185 }
 0x1ef   :  { %v1420_v63 = vmul.f32 %v186_v61, %v140_v48 }
 0x1f1   :  { %v204_v0 = vpack.c.bf16 %v1420_v63, %v1420_v63 }
 0x1f3   :  { %v208_v2 = vunpack.c.l.b16 %v204_v0 }
 0x1f5   :  { %v212_v3 = vsel %vm211_vm9, %v210_v1, %v208_v2 }
 0x1f6   :  { %v213_v4 = vpack.c.b16 %v212_v3, %v212_v3 }
 0x1f8   :  { %214 = vrot.lane.b32.xlu0 %v213_v4, %s1339_s2 }
 0x26a   :  { %v215_v5 = vpop.permute.xlu0 %214 }
 0x26b   :  { %1143 = vmatmul.msk.bf16.vlgmr.msra.gmra.mxu2 %vm96_vm10, %v215_v5 }
 0x2ee   :  { %v228_v6 = vpop.f32.mrf.mxu2 }
 0x2ef   :  { %v233_v7 = vrot.slane %v228_v6, 7  ;;  %v237_v8 = vadd.f32 %v228_v6, %v1398_v12 }
 0x2f1   :  { %v236_v9 = vadd.f32 %v233_v7, %v1401_v15  ;;  %1197 = vtanh.f32 %v237_v8  ;;  %v1145_v14 = vmul.f32 -1.442695, %v237_v8 }
 0x2f3   :  { %1199 = vtanh.f32 %v236_v9  ;;  %v1144_v20 = vmul.f32 -1.442695, %v236_v9 }
 0x2f4   :  { %1201 = vpow2.f32 %v1145_v14 }
 0x2f6   :  { %v230_v10 = vpop.f32.mrf.mxu2 }
 0x2f7   :  { %v1198_v11 = vpop.eup %1197 }
 0x2f8   :  { %290 = vrot.lane.b32.xlu2 %v1198_v11, %s1336_s28 }
 0x2f9   :  { %v1200_v13 = vpop.eup %1199 }
 0x2fa   :  { %288 = vrot.lane.b32.xlu1 %v1200_v13, %s1336_s28  ;;  %v1202_v16 = vpop.eup %1201 }
 0x2fb   :  { %v245_v17 = vadd.f32 1.0, %v1202_v16 }
 0x2fd   :  { %1203 = vrcp.f32 %v245_v17  ;;  %v272_v25 = vand.u32 2147483648, %v245_v17  ;;  %vm266_vm12 = vweird.f32 %v245_v17  ;;  %v270_v27 = vand.u32 2147483647, %v245_v17 }
 0x2fe   :  { %1205 = vpow2.f32 %v1144_v20 }
 0x2ff   :  { %v273_v29 = vor.u32 1.1754944e-38, %v272_v25  ;;  %vm271_vm14 = vcmp.eq.f32.partialorder %v270_v27, 8.507059e+37 }
 0x303   :  { %v1204_v18 = vpop.eup %1203 }
 0x304   :  { %v262_v19 = vmul.f32 %v1204_v18, %v245_v17  ;;  %v1206_v23 = vpop.eup %1205  ;;  %vm267_vm11 = vweird.f32 %v1204_v18 }
 0x305   :  { %v244_v26 = vadd.f32 1.0, %v1206_v23  ;;  %vm268_vm13 = vmor %vm266_vm12, %vm267_vm11 }
 0x306   :  { %v263_v21 = vsub.f32 1.0, %v262_v19 }
 0x307   :  { %1207 = vrcp.f32 %v244_v26  ;;  %v257_v38 = vand.u32 2147483648, %v244_v26  ;;  %vm251_vm0 = vweird.f32 %v244_v26  ;;  %v255_v39 = vand.u32 2147483647, %v244_v26 }
 0x308   :  { %v264_v22 = vmul.f32 %v1204_v18, %v263_v21 }
 0x309   :  { %v258_v41 = vor.u32 1.1754944e-38, %v257_v38  ;;  %vm256_vm2 = vcmp.eq.f32.partialorder %v255_v39, 8.507059e+37 }
 0x30a   :  { %v265_v24 = vadd.f32 %v1204_v18, %v264_v22 }
 0x30c   :  { %v269_v28 = vsel %vm268_vm13, %v1204_v18, %v265_v24 }
 0x30d   :  { %v274_v31 = vsel %vm271_vm14, %v273_v29, %v269_v28  ;;  %v1208_v33 = vpop.eup %1207 }
 0x30e   :  { %v247_v34 = vmul.f32 %v1208_v33, %v244_v26  ;;  %vm252_vm15 = vweird.f32 %v1208_v33  ;;  %v285_v46 = vmul.f32 %v281_v45, %v274_v31 }
 0x30f   :  { %vm253_vm1 = vmor %vm251_vm0, %vm252_vm15 }
 0x310   :  { %v248_v35 = vsub.f32 1.0, %v247_v34 }
 0x312   :  { %v249_v36 = vmul.f32 %v1208_v33, %v248_v35 }
 0x314   :  { %v250_v37 = vadd.f32 %v1208_v33, %v249_v36 }
 0x316   :  { %v254_v40 = vsel %vm253_vm1, %v1208_v33, %v250_v37 }
 0x317   :  { %v259_v43 = vsel %vm256_vm2, %v258_v41, %v254_v40 }
 0x318   :  { %v284_v51 = vmul.f32 %v280_v50, %v259_v43 }
 0x352   :  { %v291_v30 = vpop.permute.xlu2 %290 }
 0x353   :  { %v295_v32 = vmul.f32 %v291_v30, %v274_v31 }
 0x355   :  { %300 = vrot.lane.b32.xlu1 %v295_v32, %s1339_s2 }
 0x36c   :  { %v289_v42 = vpop.permute.xlu1 %288 }
 0x36d   :  { %v294_v44 = vmul.f32 %v289_v42, %v259_v43 }
 0x36f   :  { %298 = vrot.lane.b32.xlu0 %v294_v44, %s1339_s2 }
 0x3c7   :  { %v301_v47 = vpop.permute.xlu1 %300 }
 0x3c8   :  { %v1434_v48 = vadd.f32 %v301_v47, %v285_v46 }
 0x3ca   :  { %1209 = vtanh.f32 %v1434_v48  ;;  %v406_v46 = vrot.slane %v1434_v48, 7 }
 0x3d0   :  { %v1210_v49 = vpop.eup %1209 }
 0x3d1   :  { %312 = vrot.lane.b32.xlu0 %v1210_v49, %s1336_s28 }
 0x3e1   :  { %v299_v53 = vpop.permute.xlu0 %298 }
 0x3e2   :  { %v1439_v54 = vadd.f32 %v299_v53, %v284_v51 }
 0x3e4   :  { %1211 = vtanh.f32 %v1439_v54  ;;  %v405_v45 = vrot.slane %v1439_v54, 7 }
 0x3ea   :  { %v1212_v55 = vpop.eup %1211 }
 0x3eb   :  { %310 = vrot.lane.b32.xlu2 %v1212_v55, %s1336_s28 }
 0x443   :  { %v313_v52 = vpop.permute.xlu0 %312 }
 0x444   :  { %v1443_v57 = vmul.f32 %v313_v52, %v274_v31 }
 0x445   :  { %v311_v58 = vpop.permute.xlu2 %310 }
 0x446   :  { %v1445_v60 = vmul.f32 %v311_v58, %v259_v43  ;;  %v330_v61 = vpack.c.bf16 %v1443_v57, %v1443_v57 }
 0x448   :  { %v329_v56 = vpack.c.bf16 %v1445_v60, %v1445_v60  ;;  %v334_v0 = vunpack.c.l.b16 %v330_v61 }
 0x44a   :  { %v333_v62 = vunpack.c.l.b16 %v329_v56 }
 0x44c   :  { %v335_v1 = vrot.slane %v333_v62, 1 }
 0x44e   :  { %v336_v2 = vsel %vm211_vm9, %v334_v0, %v335_v1 }
 0x44f   :  { %v337_v3 = vpack.c.b16 %v336_v2, %v336_v2 }
 0x451   :  { %338 = vrot.lane.b32.xlu1 %v337_v3, %s1339_s2 }
 0x4c3   :  { %v339_v4 = vpop.permute.xlu1 %338 }
 0x4c4   :  { %1146 = vmatmul.msk.bf16.vlgmr.msrb.gmra.mxu3 %vm96_vm10, %v339_v4 }
 0x547   :  { %v352_v5 = vpop.f32.mrf.mxu3 }
 0x548   :  { %v357_v6 = vrot.slane %v352_v5, 6  ;;  %v358_v7 = vrot.slane %v352_v5, 7 }
 0x54a   :  { %v361_v8 = vadd.f32 %v357_v6, %v1401_v15  ;;  %v362_v9 = vadd.f32 %v358_v7, %v1398_v12 }
 0x54c   :  { %1213 = vtanh.f32 %v361_v8  ;;  %v1147_v14 = vmul.f32 -1.442695, %v361_v8  ;;  %v1148_v19 = vmul.f32 -1.442695, %v362_v9 }
 0x54d   :  { %1215 = vtanh.f32 %v362_v9 }
 0x54e   :  { %1217 = vpow2.f32 %v1147_v14 }
 0x54f   :  { %v354_v10 = vpop.f32.mrf.mxu3 }
 0x552   :  { %v1214_v11 = vpop.eup %1213 }
 0x553   :  { %v1216_v13 = vpop.eup %1215  ;;  %413 = vrot.lane.b32.xlu2 %v1214_v11, %s1336_s28 }
 0x554   :  { %415 = vrot.lane.b32.xlu0 %v1216_v13, %s1336_s28  ;;  %v1218_v16 = vpop.eup %1217 }
 0x555   :  { %v369_v17 = vadd.f32 1.0, %v1218_v16 }
 0x557   :  { %1219 = vrcp.f32 %v369_v17  ;;  %v382_v26 = vand.u32 2147483648, %v369_v17  ;;  %vm376_vm4 = vweird.f32 %v369_v17  ;;  %v380_v27 = vand.u32 2147483647, %v369_v17 }
 0x558   :  { %1221 = vpow2.f32 %v1148_v19 }
 0x559   :  { %v383_v29 = vor.u32 1.1754944e-38, %v382_v26  ;;  %vm381_vm6 = vcmp.eq.f32.partialorder %v380_v27, 8.507059e+37 }
 0x55d   :  { %v1220_v18 = vpop.eup %1219 }
 0x55e   :  { %v372_v20 = vmul.f32 %v1220_v18, %v369_v17  ;;  %v1222_v23 = vpop.eup %1221  ;;  %vm377_vm3 = vweird.f32 %v1220_v18 }
 0x55f   :  { %v370_v24 = vadd.f32 1.0, %v1222_v23  ;;  %vm378_vm5 = vmor %vm376_vm4, %vm377_vm3 }
 0x560   :  { %v373_v21 = vsub.f32 1.0, %v372_v20 }
 0x561   :  { %1223 = vrcp.f32 %v370_v24  ;;  %v397_v38 = vand.u32 2147483648, %v370_v24  ;;  %vm391_vm8 = vweird.f32 %v370_v24  ;;  %v395_v39 = vand.u32 2147483647, %v370_v24 }
 0x562   :  { %v374_v22 = vmul.f32 %v1220_v18, %v373_v21 }
 0x563   :  { %v398_v41 = vor.u32 1.1754944e-38, %v397_v38  ;;  %vm396_vm12 = vcmp.eq.f32.partialorder %v395_v39, 8.507059e+37 }
 0x564   :  { %v375_v25 = vadd.f32 %v1220_v18, %v374_v22 }
 0x566   :  { %v379_v28 = vsel %vm378_vm5, %v1220_v18, %v375_v25 }
 0x567   :  { %v384_v31 = vsel %vm381_vm6, %v383_v29, %v379_v28  ;;  %v1224_v33 = vpop.eup %1223 }
 0x568   :  { %v387_v34 = vmul.f32 %v1224_v33, %v370_v24  ;;  %vm392_vm7 = vweird.f32 %v1224_v33  ;;  %v409_v47 = vmul.f32 %v405_v45, %v384_v31 }
 0x569   :  { %vm393_vm11 = vmor %vm391_vm8, %vm392_vm7 }
 0x56a   :  { %v388_v35 = vsub.f32 1.0, %v387_v34 }
 0x56c   :  { %v389_v36 = vmul.f32 %v1224_v33, %v388_v35 }
 0x56e   :  { %v390_v37 = vadd.f32 %v1224_v33, %v389_v36 }
 0x570   :  { %v394_v40 = vsel %vm393_vm11, %v1224_v33, %v390_v37 }
 0x571   :  { %v399_v43 = vsel %vm396_vm12, %v398_v41, %v394_v40 }
 0x572   :  { %v410_v49 = vmul.f32 %v406_v46, %v399_v43 }
 0x5ad   :  { %v414_v30 = vpop.permute.xlu2 %413 }
 0x5ae   :  { %v419_v32 = vmul.f32 %v414_v30, %v384_v31 }
 0x5b0   :  { %423 = vrot.lane.b32.xlu1 %v419_v32, %s1339_s2 }
 0x5c6   :  { %v416_v42 = vpop.permute.xlu0 %415 }
 0x5c7   :  { %v420_v44 = vmul.f32 %v416_v42, %v399_v43 }
 0x5c9   :  { %425 = vrot.lane.b32.xlu2 %v420_v44, %s1339_s2 }
 0x622   :  { %v424_v50 = vpop.permute.xlu1 %423 }
 0x623   :  { %v426_v51 = vpop.permute.xlu2 %425  ;;  %v1462_v53 = vadd.f32 %v424_v50, %v409_v47 }
 0x624   :  { %v1464_v55 = vadd.f32 %v426_v51, %v410_v49 }
 0x625   :  { %1225 = vtanh.f32 %v1462_v53  ;;  %v531_v49 = vrot.slane %v1462_v53, 7 }
 0x626   :  { %1227 = vtanh.f32 %v1464_v55 }
 0x62b   :  { %v1226_v52 = vpop.eup %1225 }
 0x62c   :  { %v1228_v58 = vpop.eup %1227  ;;  %435 = vrot.lane.b32.xlu0 %v1226_v52, %s1336_s28 }
 0x62d   :  { %437 = vrot.lane.b32.xlu1 %v1228_v58, %s1336_s28 }
 0x69e   :  { %v436_v54 = vpop.permute.xlu0 %435 }
 0x69f   :  { %v438_v48 = vpop.permute.xlu1 %437  ;;  %v1470_v61 = vmul.f32 %v436_v54, %v384_v31  ;;  %v532_v54 = vrot.slane %v1464_v55, 7 }
 0x6a0   :  { %v1472_v56 = vmul.f32 %v438_v48, %v399_v43 }
 0x6a1   :  { %v454_v62 = vpack.c.bf16 %v1470_v61, %v1470_v61 }
 0x6a2   :  { %v455_v0 = vpack.c.bf16 %v1472_v56, %v1472_v56 }
 0x6a3   :  { %v458_v1 = vunpack.c.l.b16 %v454_v62 }
 0x6a4   :  { %v459_v2 = vunpack.c.l.b16 %v455_v0 }
 0x6a5   :  { %v460_v3 = vrot.slane %v458_v1, 2 }
 0x6a6   :  { %v461_v4 = vrot.slane %v459_v2, 1 }
 0x6a8   :  { %v462_v5 = vsel %vm211_vm9, %v461_v4, %v460_v3 }
 0x6a9   :  { %v463_v6 = vpack.c.b16 %v462_v5, %v462_v5 }
 0x6ab   :  { %464 = vrot.lane.b32.xlu2 %v463_v6, %s1339_s2 }
 0x705   :  { %v465_v7 = vpop.permute.xlu2 %464 }
 0x706   :  { %1149 = vmatmul.msk.bf16.vlgmr.msrb.gmra.mxu0 %vm96_vm10, %v465_v7 }
 0x783   :  { %v478_v8 = vpop.f32.mrf.mxu0 }
 0x784   :  { %v483_v9 = vrot.slane %v478_v8, 5  ;;  %v484_v10 = vrot.slane %v478_v8, 6 }
 0x786   :  { %v487_v11 = vadd.f32 %v483_v9, %v1401_v15  ;;  %v488_v13 = vadd.f32 %v484_v10, %v1398_v12 }
 0x788   :  { %1229 = vtanh.f32 %v487_v11  ;;  %v1150_v18 = vmul.f32 -1.442695, %v487_v11  ;;  %v1151_v19 = vmul.f32 -1.442695, %v488_v13 }
 0x789   :  { %1231 = vtanh.f32 %v488_v13 }
 0x78a   :  { %1233 = vpow2.f32 %v1150_v18 }
 0x78b   :  { %v480_v14 = vpop.f32.mrf.mxu0  ;;  %1235 = vpow2.f32 %v1151_v19 }
 0x78e   :  { %v1230_v16 = vpop.eup %1229 }
 0x78f   :  { %v1232_v17 = vpop.eup %1231  ;;  %539 = vrot.lane.b32.xlu0 %v1230_v16, %s1336_s28 }
 0x790   :  { %541 = vrot.lane.b32.xlu1 %v1232_v17, %s1336_s28  ;;  %v1234_v20 = vpop.eup %1233 }
 0x791   :  { %v1236_v21 = vpop.eup %1235  ;;  %v495_v22 = vadd.f32 1.0, %v1234_v20 }
 0x792   :  { %v496_v23 = vadd.f32 1.0, %v1236_v21 }
 0x793   :  { %1237 = vrcp.f32 %v495_v22  ;;  %v508_v34 = vand.u32 2147483648, %v495_v22  ;;  %vm502_vm15 = vweird.f32 %v495_v22  ;;  %v506_v36 = vand.u32 2147483647, %v495_v22 }
 0x794   :  { %1239 = vrcp.f32 %v496_v23  ;;  %v523_v35 = vand.u32 2147483648, %v496_v23  ;;  %vm517_vm0 = vweird.f32 %v496_v23  ;;  %v521_v37 = vand.u32 2147483647, %v496_v23 }
 0x795   :  { %v509_v40 = vor.u32 1.1754944e-38, %v508_v34  ;;  %vm507_vm3 = vcmp.eq.f32.partialorder %v506_v36, 8.507059e+37 }
 0x796   :  { %v524_v41 = vor.u32 1.1754944e-38, %v523_v35  ;;  %vm522_vm4 = vcmp.eq.f32.partialorder %v521_v37, 8.507059e+37 }
 0x799   :  { %v1238_v24 = vpop.eup %1237 }
 0x79a   :  { %v1240_v25 = vpop.eup %1239  ;;  %v498_v26 = vmul.f32 %v1238_v24, %v495_v22  ;;  %vm503_vm13 = vweird.f32 %v1238_v24 }
 0x79b   :  { %v513_v27 = vmul.f32 %v1240_v25, %v496_v23  ;;  %vm518_vm14 = vweird.f32 %v1240_v25  ;;  %vm504_vm1 = vmor %vm502_vm15, %vm503_vm13 }
 0x79c   :  { %v499_v28 = vsub.f32 1.0, %v498_v26  ;;  %vm519_vm2 = vmor %vm517_vm0, %vm518_vm14 }
 0x79d   :  { %v514_v29 = vsub.f32 1.0, %v513_v27 }
 0x79e   :  { %v500_v30 = vmul.f32 %v1238_v24, %v499_v28 }
 0x79f   :  { %v515_v31 = vmul.f32 %v1240_v25, %v514_v29 }
 0x7a0   :  { %v501_v32 = vadd.f32 %v1238_v24, %v500_v30 }
 0x7a1   :  { %v516_v33 = vadd.f32 %v1240_v25, %v515_v31 }
 0x7a2   :  { %v505_v38 = vsel %vm504_vm1, %v1238_v24, %v501_v32 }
 0x7a3   :  { %v520_v39 = vsel %vm519_vm2, %v1240_v25, %v516_v33  ;;  %v510_v43 = vsel %vm507_vm3, %v509_v40, %v505_v38 }
 0x7a4   :  { %v525_v45 = vsel %vm522_vm4, %v524_v41, %v520_v39  ;;  %v535_v50 = vmul.f32 %v531_v49, %v510_v43 }
 0x7a5   :  { %v536_v48 = vmul.f32 %v532_v54, %v525_v45 }
 0x801   :  { %v540_v42 = vpop.permute.xlu0 %539 }
 0x802   :  { %v542_v44 = vpop.permute.xlu1 %541  ;;  %v545_v46 = vmul.f32 %v540_v42, %v510_v43 }
 0x803   :  { %v546_v47 = vmul.f32 %v542_v44, %v525_v45 }
 0x804   :  { %549 = vrot.lane.b32.xlu2 %v545_v46, %s1339_s2 }
 0x805   :  { %551 = vrot.lane.b32.xlu0 %v546_v47, %s1339_s2 }
 0x85e   :  { %v550_v51 = vpop.permute.xlu2 %549 }
 0x85f   :  { %v1488_v52 = vadd.f32 %v550_v51, %v535_v50 }
 0x861   :  { %1241 = vtanh.f32 %v1488_v52 }
 0x867   :  { %v1242_v58 = vpop.eup %1241 }
 0x868   :  { %561 = vrot.lane.b32.xlu1 %v1242_v58, %s1336_s28 }
 0x877   :  { %v552_v62 = vpop.permute.xlu0 %551 }
 0x878   :  { %v1493_v0 = vadd.f32 %v552_v62, %v536_v48 }
 0x87a   :  { %1243 = vtanh.f32 %v1493_v0  ;;  %v658_v48 = vrot.slane %v1493_v0, 7 }
 0x880   :  { %v1244_v1 = vpop.eup %1243 }
 0x881   :  { %563 = vrot.lane.b32.xlu2 %v1244_v1, %s1336_s28 }
 0x8da   :  { %v562_v53 = vpop.permute.xlu1 %561 }
 0x8db   :  { %v564_v2 = vpop.permute.xlu2 %563  ;;  %v1497_v3 = vmul.f32 %v562_v53, %v510_v43 }
 0x8dc   :  { %v1499_v4 = vmul.f32 %v564_v2, %v525_v45 }
 0x8dd   :  { %v580_v5 = vpack.c.bf16 %v1497_v3, %v1497_v3 }
 0x8de   :  { %v581_v55 = vpack.c.bf16 %v1499_v4, %v1499_v4 }
 0x8df   :  { %v584_v6 = vunpack.c.l.b16 %v580_v5  ;;  %v657_v5 = vrot.slane %v1488_v52, 7 }
 0x8e0   :  { %v585_v7 = vunpack.c.l.b16 %v581_v55 }
 0x8e1   :  { %v586_v8 = vrot.slane %v584_v6, 3 }
 0x8e2   :  { %v587_v9 = vrot.slane %v585_v7, 2 }
 0x8e4   :  { %v588_v10 = vsel %vm211_vm9, %v587_v9, %v586_v8 }
 0x8e5   :  { %v589_v11 = vpack.c.b16 %v588_v10, %v588_v10 }
 0x8e7   :  { %590 = vrot.lane.b32.xlu0 %v589_v11, %s1339_s2 }
 0x959   :  { %v591_v13 = vpop.permute.xlu0 %590 }
 0x95a   :  { %1152 = vmatmul.msk.bf16.vlgmr.msrb.gmra.mxu1 %vm96_vm10, %v591_v13 }
 0x9d7   :  { %v604_v14 = vpop.f32.mrf.mxu1 }
 0x9d8   :  { %v609_v16 = vrot.slane %v604_v14, 4  ;;  %v610_v17 = vrot.slane %v604_v14, 5 }
 0x9da   :  { %v613_v18 = vadd.f32 %v609_v16, %v1401_v15  ;;  %v614_v19 = vadd.f32 %v610_v17, %v1398_v12 }
 0x9dc   :  { %1245 = vtanh.f32 %v613_v18  ;;  %v1154_v23 = vmul.f32 -1.442695, %v614_v19  ;;  %v1153_v27 = vmul.f32 -1.442695, %v613_v18 }
 0x9dd   :  { %1247 = vtanh.f32 %v614_v19 }
 0x9de   :  { %1249 = vpow2.f32 %v1154_v23 }
 0x9df   :  { %v606_v20 = vpop.f32.mrf.mxu1 }
 0x9e2   :  { %v1246_v21 = vpop.eup %1245 }
 0x9e3   :  { %v1248_v22 = vpop.eup %1247  ;;  %665 = vrot.lane.b32.xlu1 %v1246_v21, %s1336_s28 }
 0x9e4   :  { %667 = vrot.lane.b32.xlu2 %v1248_v22, %s1336_s28  ;;  %v1250_v24 = vpop.eup %1249 }
 0x9e5   :  { %v622_v25 = vadd.f32 1.0, %v1250_v24 }
 0x9e7   :  { %1251 = vrcp.f32 %v622_v25  ;;  %v649_v34 = vand.u32 2147483648, %v622_v25  ;;  %vm643_vm6 = vweird.f32 %v622_v25  ;;  %v647_v35 = vand.u32 2147483647, %v622_v25 }
 0x9e8   :  { %1253 = vpow2.f32 %v1153_v27 }
 0x9e9   :  { %v650_v37 = vor.u32 1.1754944e-38, %v649_v34  ;;  %vm648_vm8 = vcmp.eq.f32.partialorder %v647_v35, 8.507059e+37 }
 0x9ed   :  { %v1252_v26 = vpop.eup %1251 }
 0x9ee   :  { %v639_v28 = vmul.f32 %v1252_v26, %v622_v25  ;;  %v1254_v30 = vpop.eup %1253  ;;  %vm644_vm5 = vweird.f32 %v1252_v26 }
 0x9ef   :  { %v621_v32 = vadd.f32 1.0, %v1254_v30  ;;  %vm645_vm7 = vmor %vm643_vm6, %vm644_vm5 }
 0x9f0   :  { %v640_v29 = vsub.f32 1.0, %v639_v28 }
 0x9f1   :  { %1255 = vrcp.f32 %v621_v32  ;;  %v634_v46 = vand.u32 2147483648, %v621_v32  ;;  %vm628_vm12 = vweird.f32 %v621_v32  ;;  %v632_v47 = vand.u32 2147483647, %v621_v32 }
 0x9f2   :  { %v641_v31 = vmul.f32 %v1252_v26, %v640_v29 }
 0x9f3   :  { %v635_v50 = vor.u32 1.1754944e-38, %v634_v46  ;;  %vm633_vm14 = vcmp.eq.f32.partialorder %v632_v47, 8.507059e+37 }
 0x9f4   :  { %v642_v33 = vadd.f32 %v1252_v26, %v641_v31 }
 0x9f6   :  { %v646_v36 = vsel %vm645_vm7, %v1252_v26, %v642_v33 }
 0x9f7   :  { %v651_v39 = vsel %vm648_vm8, %v650_v37, %v646_v36  ;;  %v1256_v40 = vpop.eup %1255 }
 0x9f8   :  { %v624_v42 = vmul.f32 %v1256_v40, %v621_v32  ;;  %vm629_vm11 = vweird.f32 %v1256_v40  ;;  %v662_v62 = vmul.f32 %v658_v48, %v651_v39 }
 0x9f9   :  { %vm630_vm13 = vmor %vm628_vm12, %vm629_vm11 }
 0x9fa   :  { %v625_v43 = vsub.f32 1.0, %v624_v42 }
 0x9fc   :  { %v626_v44 = vmul.f32 %v1256_v40, %v625_v43 }
 0x9fe   :  { %v627_v45 = vadd.f32 %v1256_v40, %v626_v44 }
 0xa00   :  { %v631_v49 = vsel %vm630_vm13, %v1256_v40, %v627_v45 }
 0xa01   :  { %v636_v58 = vsel %vm633_vm14, %v635_v50, %v631_v49 }
 0xa02   :  { %v661_v55 = vmul.f32 %v657_v5, %v636_v58 }
 0xa3e   :  { %v668_v38 = vpop.permute.xlu2 %667 }
 0xa3f   :  { %v672_v41 = vmul.f32 %v668_v38, %v651_v39 }
 0xa41   :  { %677 = vrot.lane.b32.xlu1 %v672_v41, %s1339_s2 }
 0xa55   :  { %v666_v51 = vpop.permute.xlu1 %665 }
 0xa56   :  { %v671_v54 = vmul.f32 %v666_v51, %v636_v58 }
 0xa58   :  { %675 = vrot.lane.b32.xlu0 %v671_v54, %s1339_s2 }
 0xab3   :  { %v678_v1 = vpop.permute.xlu1 %677 }
 0xab4   :  { %v1515_v53 = vadd.f32 %v678_v1, %v662_v62 }
 0xab6   :  { %1257 = vtanh.f32 %v1515_v53 }
 0xabc   :  { %v1258_v2 = vpop.eup %1257 }
 0xabd   :  { %689 = vrot.lane.b32.xlu0 %v1258_v2, %s1336_s28 }
 0xaca   :  { %v676_v6 = vpop.permute.xlu0 %675 }
 0xacb   :  { %v1520_v7 = vadd.f32 %v676_v6, %v661_v55 }
 0xacd   :  { %1259 = vtanh.f32 %v1520_v7 }
 0xad3   :  { %v1260_v8 = vpop.eup %1259 }
 0xad4   :  { %687 = vrot.lane.b32.xlu2 %v1260_v8, %s1336_s28  ;;  %v783_v8 = vrot.slane %v1520_v7, 7 }
 0xb2e   :  { %v688_v0 = vpop.permute.xlu2 %687 }
 0xb2f   :  { %v690_v9 = vpop.permute.xlu0 %689  ;;  %v1524_v10 = vmul.f32 %v688_v0, %v636_v58  ;;  %v784_v0 = vrot.slane %v1515_v53, 7 }
 0xb30   :  { %v1526_v11 = vmul.f32 %v690_v9, %v651_v39 }
 0xb31   :  { %v706_v13 = vpack.c.bf16 %v1524_v10, %v1524_v10 }
 0xb32   :  { %v707_v52 = vpack.c.bf16 %v1526_v11, %v1526_v11 }
 0xb33   :  { %v710_v14 = vunpack.c.l.b16 %v706_v13 }
 0xb34   :  { %v711_v16 = vunpack.c.l.b16 %v707_v52 }
 0xb35   :  { %v712_v17 = vrot.slane %v710_v14, 4 }
 0xb36   :  { %v713_v18 = vrot.slane %v711_v16, 3 }
 0xb38   :  { %v714_v19 = vsel %vm211_vm9, %v713_v18, %v712_v17 }
 0xb39   :  { %v715_v20 = vpack.c.b16 %v714_v19, %v714_v19 }
 0xb3b   :  { %716 = vrot.lane.b32.xlu1 %v715_v20, %s1339_s2 }
 0xbad   :  { %v717_v21 = vpop.permute.xlu1 %716 }
 0xbae   :  { %1155 = vmatmul.msk.bf16.vlgmr.msrb.gmra.mxu2 %vm96_vm10, %v717_v21 }
 0xc31   :  { %v730_v22 = vpop.f32.mrf.mxu2 }
 0xc32   :  { %v735_v23 = vrot.slane %v730_v22, 3  ;;  %v736_v24 = vrot.slane %v730_v22, 4 }
 0xc34   :  { %v739_v25 = vadd.f32 %v735_v23, %v1401_v15  ;;  %v740_v26 = vadd.f32 %v736_v24, %v1398_v12 }
 0xc36   :  { %1261 = vtanh.f32 %v739_v25  ;;  %v1156_v30 = vmul.f32 -1.442695, %v739_v25  ;;  %v1157_v34 = vmul.f32 -1.442695, %v740_v26 }
 0xc37   :  { %1263 = vtanh.f32 %v740_v26 }
 0xc38   :  { %1265 = vpow2.f32 %v1156_v30 }
 0xc39   :  { %v732_v27 = vpop.f32.mrf.mxu2 }
 0xc3c   :  { %v1262_v28 = vpop.eup %1261 }
 0xc3d   :  { %v1264_v29 = vpop.eup %1263  ;;  %791 = vrot.lane.b32.xlu2 %v1262_v28, %s1336_s28 }
 0xc3e   :  { %793 = vrot.lane.b32.xlu0 %v1264_v29, %s1336_s28  ;;  %v1266_v31 = vpop.eup %1265 }
 0xc3f   :  { %v747_v32 = vadd.f32 1.0, %v1266_v31 }
 0xc41   :  { %1267 = vrcp.f32 %v747_v32  ;;  %v760_v41 = vand.u32 2147483648, %v747_v32  ;;  %vm754_vm0 = vweird.f32 %v747_v32  ;;  %v758_v42 = vand.u32 2147483647, %v747_v32 }
 0xc42   :  { %1269 = vpow2.f32 %v1157_v34 }
 0xc43   :  { %v761_v44 = vor.u32 1.1754944e-38, %v760_v41  ;;  %vm759_vm2 = vcmp.eq.f32.partialorder %v758_v42, 8.507059e+37 }
 0xc47   :  { %v1268_v33 = vpop.eup %1267 }
 0xc48   :  { %v750_v35 = vmul.f32 %v1268_v33, %v747_v32  ;;  %v1270_v38 = vpop.eup %1269  ;;  %vm755_vm15 = vweird.f32 %v1268_v33 }
 0xc49   :  { %v748_v39 = vadd.f32 1.0, %v1270_v38  ;;  %vm756_vm1 = vmor %vm754_vm0, %vm755_vm15 }
 0xc4a   :  { %v751_v36 = vsub.f32 1.0, %v750_v35 }
 0xc4b   :  { %1271 = vrcp.f32 %v748_v39  ;;  %v775_v48 = vand.u32 2147483648, %v748_v39  ;;  %vm769_vm4 = vweird.f32 %v748_v39  ;;  %v773_v62 = vand.u32 2147483647, %v748_v39 }
 0xc4c   :  { %v752_v37 = vmul.f32 %v1268_v33, %v751_v36 }
 0xc4d   :  { %v776_v2 = vor.u32 1.1754944e-38, %v775_v48  ;;  %vm774_vm6 = vcmp.eq.f32.partialorder %v773_v62, 8.507059e+37 }
 0xc4e   :  { %v753_v40 = vadd.f32 %v1268_v33, %v752_v37 }
 0xc50   :  { %v757_v43 = vsel %vm756_vm1, %v1268_v33, %v753_v40 }
 0xc51   :  { %v762_v46 = vsel %vm759_vm2, %v761_v44, %v757_v43  ;;  %v1272_v49 = vpop.eup %1271 }
 0xc52   :  { %v765_v50 = vmul.f32 %v1272_v49, %v748_v39  ;;  %vm770_vm3 = vweird.f32 %v1272_v49  ;;  %v787_v9 = vmul.f32 %v783_v8, %v762_v46 }
 0xc53   :  { %vm771_vm5 = vmor %vm769_vm4, %vm770_vm3 }
 0xc54   :  { %v766_v51 = vsub.f32 1.0, %v765_v50 }
 0xc56   :  { %v767_v58 = vmul.f32 %v1272_v49, %v766_v51 }
 0xc58   :  { %v768_v54 = vadd.f32 %v1272_v49, %v767_v58 }
 0xc5a   :  { %v772_v1 = vsel %vm771_vm5, %v1272_v49, %v768_v54 }
 0xc5b   :  { %v777_v55 = vsel %vm774_vm6, %v776_v2, %v772_v1 }
 0xc5c   :  { %v788_v13 = vmul.f32 %v784_v0, %v777_v55 }
 0xc97   :  { %v792_v45 = vpop.permute.xlu2 %791 }
 0xc98   :  { %v797_v47 = vmul.f32 %v792_v45, %v762_v46 }
 0xc9a   :  { %801 = vrot.lane.b32.xlu1 %v797_v47, %s1339_s2 }
 0xcb0   :  { %v794_v5 = vpop.permute.xlu0 %793 }
 0xcb1   :  { %v798_v6 = vmul.f32 %v794_v5, %v777_v55 }
 0xcb3   :  { %803 = vrot.lane.b32.xlu2 %v798_v6, %s1339_s2 }
 0xd0c   :  { %v802_v52 = vpop.permute.xlu1 %801 }
 0xd0d   :  { %v804_v14 = vpop.permute.xlu2 %803  ;;  %v1543_v16 = vadd.f32 %v802_v52, %v787_v9 }
 0xd0e   :  { %v1545_v17 = vadd.f32 %v804_v14, %v788_v13 }
 0xd0f   :  { %1273 = vtanh.f32 %v1543_v16 }
 0xd10   :  { %1275 = vtanh.f32 %v1545_v17 }
 0xd15   :  { %v1274_v18 = vpop.eup %1273 }
 0xd16   :  { %v1276_v19 = vpop.eup %1275  ;;  %813 = vrot.lane.b32.xlu0 %v1274_v18, %s1336_s28 }
 0xd17   :  { %815 = vrot.lane.b32.xlu1 %v1276_v19, %s1336_s28 }
 0xd88   :  { %v814_v7 = vpop.permute.xlu0 %813 }
 0xd89   :  { %v816_v53 = vpop.permute.xlu1 %815  ;;  %v1551_v20 = vmul.f32 %v814_v7, %v762_v46 }
 0xd8a   :  { %v1553_v21 = vmul.f32 %v816_v53, %v777_v55  ;;  %v909_v53 = vrot.slane %v1543_v16, 7 }
 0xd8b   :  { %v832_v22 = vpack.c.bf16 %v1551_v20, %v1551_v20 }
 0xd8c   :  { %v833_v23 = vpack.c.bf16 %v1553_v21, %v1553_v21 }
 0xd8d   :  { %v836_v24 = vunpack.c.l.b16 %v832_v22 }
 0xd8e   :  { %v837_v25 = vunpack.c.l.b16 %v833_v23 }
 0xd8f   :  { %v838_v26 = vrot.slane %v836_v24, 5 }
 0xd90   :  { %v839_v27 = vrot.slane %v837_v25, 4 }
 0xd92   :  { %v840_v28 = vsel %vm211_vm9, %v839_v27, %v838_v26  ;;  %v910_v26 = vrot.slane %v1545_v17, 7 }
 0xd93   :  { %v841_v29 = vpack.c.b16 %v840_v28, %v840_v28 }
 0xd95   :  { %842 = vrot.lane.b32.xlu2 %v841_v29, %s1339_s2 }
 0xdef   :  { %v843_v30 = vpop.permute.xlu2 %842 }
 0xdf0   :  { %1158 = vmatmul.msk.bf16.vlgmr.msra.gmra.mxu3 %vm96_vm10, %v843_v30 }
 0xe73   :  { %v856_v31 = vpop.f32.mrf.mxu3 }
 0xe74   :  { %v861_v32 = vrot.slane %v856_v31, 2  ;;  %v862_v33 = vrot.slane %v856_v31, 3 }
 0xe76   :  { %v865_v34 = vadd.f32 %v861_v32, %v1401_v15  ;;  %v866_v35 = vadd.f32 %v862_v33, %v1398_v12 }
 0xe78   :  { %1277 = vtanh.f32 %v865_v34  ;;  %v1159_v39 = vmul.f32 -1.442695, %v865_v34  ;;  %v1160_v40 = vmul.f32 -1.442695, %v866_v35 }
 0xe79   :  { %1279 = vtanh.f32 %v866_v35 }
 0xe7a   :  { %1281 = vpow2.f32 %v1159_v39 }
 0xe7b   :  { %v858_v36 = vpop.f32.mrf.mxu3  ;;  %1283 = vpow2.f32 %v1160_v40 }
 0xe7e   :  { %v1278_v37 = vpop.eup %1277 }
 0xe7f   :  { %v1280_v38 = vpop.eup %1279  ;;  %917 = vrot.lane.b32.xlu0 %v1278_v37, %s1336_s28 }
 0xe80   :  { %919 = vrot.lane.b32.xlu1 %v1280_v38, %s1336_s28  ;;  %v1282_v41 = vpop.eup %1281 }
 0xe81   :  { %v1284_v42 = vpop.eup %1283  ;;  %v873_v43 = vadd.f32 1.0, %v1282_v41 }
 0xe82   :  { %v874_v44 = vadd.f32 1.0, %v1284_v42 }
 0xe83   :  { %1285 = vrcp.f32 %v873_v43  ;;  %v886_v1 = vand.u32 2147483648, %v873_v43  ;;  %vm880_vm11 = vweird.f32 %v873_v43  ;;  %v884_v5 = vand.u32 2147483647, %v873_v43 }
 0xe84   :  { %1287 = vrcp.f32 %v874_v44  ;;  %v901_v2 = vand.u32 2147483648, %v874_v44  ;;  %vm895_vm12 = vweird.f32 %v874_v44  ;;  %v899_v55 = vand.u32 2147483647, %v874_v44 }
 0xe85   :  { %v887_v0 = vor.u32 1.1754944e-38, %v886_v1  ;;  %vm885_vm15 = vcmp.eq.f32.partialorder %v884_v5, 8.507059e+37 }
 0xe86   :  { %v902_v9 = vor.u32 1.1754944e-38, %v901_v2  ;;  %vm900_vm0 = vcmp.eq.f32.partialorder %v899_v55, 8.507059e+37 }
 0xe89   :  { %v1286_v45 = vpop.eup %1285 }
 0xe8a   :  { %v1288_v46 = vpop.eup %1287  ;;  %v876_v47 = vmul.f32 %v1286_v45, %v873_v43  ;;  %vm881_vm7 = vweird.f32 %v1286_v45 }
 0xe8b   :  { %v891_v49 = vmul.f32 %v1288_v46, %v874_v44  ;;  %vm896_vm8 = vweird.f32 %v1288_v46  ;;  %vm882_vm13 = vmor %vm880_vm11, %vm881_vm7  ;;  %vm577_vm11 = vcmask 257027  }
 0xe8c   :  { %v877_v50 = vsub.f32 1.0, %v876_v47  ;;  %vm897_vm14 = vmor %vm895_vm12, %vm896_vm8  ;;  %vm201_vm8 = vcmask 253952   ;;  %vm955_vm12 = vcmask 260102  }
 0xe8d   :  { %v892_v51 = vsub.f32 1.0, %v891_v49 }
 0xe8e   :  { %v878_v58 = vmul.f32 %v1286_v45, %v877_v50 }
 0xe8f   :  { %v893_v54 = vmul.f32 %v1288_v46, %v892_v51 }
 0xe90   :  { %v879_v48 = vadd.f32 %v1286_v45, %v878_v58 }
 0xe91   :  { %v894_v62 = vadd.f32 %v1288_v46, %v893_v54 }
 0xe92   :  { %v883_v6 = vsel %vm882_vm13, %v1286_v45, %v879_v48  ;;  %vm326_vm13 = vcmask 254977  }
 0xe93   :  { %v898_v8 = vsel %vm897_vm14, %v1288_v46, %v894_v62  ;;  %v888_v52 = vsel %vm885_vm15, %v887_v0, %v883_v6  ;;  %vm703_vm14 = vcmask 258052   ;;  %vm451_vm15 = vcmask 256002  }
 0xe94   :  { %v903_v18 = vsel %vm900_vm0, %v902_v9, %v898_v8  ;;  %v913_v22 = vmul.f32 %v909_v53, %v888_v52  ;;  %vm829_vm0 = vcmask 259077  }
 0xe95   :  { %v914_v27 = vmul.f32 %v910_v26, %v903_v18 }
 0xef1   :  { %v918_v13 = vpop.permute.xlu0 %917 }
 0xef2   :  { %v920_v14 = vpop.permute.xlu1 %919  ;;  %v923_v19 = vmul.f32 %v918_v13, %v888_v52 }
 0xef3   :  { %v924_v7 = vmul.f32 %v920_v14, %v903_v18 }
 0xef4   :  { %927 = vrot.lane.b32.xlu2 %v923_v19, %s1339_s2 }
 0xef5   :  { %929 = vrot.lane.b32.xlu0 %v924_v7, %s1339_s2 }
 0xf4e   :  { %v928_v23 = vpop.permute.xlu2 %927 }
 0xf4f   :  { %v1569_v24 = vadd.f32 %v928_v23, %v913_v22 }
 0xf51   :  { %1289 = vtanh.f32 %v1569_v24 }
 0xf57   :  { %v1290_v25 = vpop.eup %1289 }
 0xf58   :  { %939 = vrot.lane.b32.xlu1 %v1290_v25, %s1336_s28 }
 0xf67   :  { %v930_v28 = vpop.permute.xlu0 %929 }
 0xf68   :  { %v1574_v29 = vadd.f32 %v930_v28, %v914_v27 }
 0xf6a   :  { %1291 = vtanh.f32 %v1574_v29 }
 0xf70   :  { %v1292_v30 = vpop.eup %1291 }
 0xf71   :  { %941 = vrot.lane.b32.xlu2 %v1292_v30, %s1336_s28 }
 0xfca   :  { %v940_v16 = vpop.permute.xlu1 %939 }
 0xfcb   :  { %v942_v31 = vpop.permute.xlu2 %941  ;;  %v1578_v32 = vmul.f32 %v940_v16, %v888_v52 }
 0xfcc   :  { %v1580_v33 = vmul.f32 %v942_v31, %v903_v18 }
 0xfcd   :  { %v958_v34 = vpack.c.bf16 %v1578_v32, %v1578_v32 }
 0xfce   :  { %v959_v17 = vpack.c.bf16 %v1580_v33, %v1580_v33 }
 0xfcf   :  { %v962_v35 = vunpack.c.l.b16 %v958_v34 }
 0xfd0   :  { %v963_v36 = vunpack.c.l.b16 %v959_v17 }
 0xfd1   :  { %v964_v37 = vrot.slane %v962_v35, 6 }
 0xfd2   :  { %v965_v38 = vrot.slane %v963_v36, 5 }
 0xfd4   :  { %v966_v39 = vsel %vm211_vm9, %v965_v38, %v964_v37 }
 0xfd5   :  { %v967_v40 = vpack.c.b16 %v966_v39, %v966_v39 }
 0xfd7   :  { %968 = vrot.lane.b32.xlu0 %v967_v40, %s1339_s2 }
0x1049   :  { %v969_v41 = vpop.permute.xlu0 %968 }
0x104a   :  { %1161 = vmatmul.msk.bf16.vlgmr.msra.gmra.mxu0 %vm96_vm10, %v969_v41 }
0x10c7   :  { %v982_v42 = vpop.f32.mrf.mxu0 }
0x10c8   :  { %v987_v43 = vrot.slane %v982_v42, 1  ;;  %v988_v44 = vrot.slane %v982_v42, 2 }
0x10ca   :  { %v991_v45 = vadd.f32 %v987_v43, %v1401_v15  ;;  %v992_v46 = vadd.f32 %v988_v44, %v1398_v12  ;;  %v1088_v44 = vld [vmem:[%s1670_s4 + $0x10] sm:$0xff] }
0x10cc   :  { %1293 = vtanh.f32 %v991_v45  ;;  %v1162_v51 = vmul.f32 -1.442695, %v991_v45  ;;  %v1163_v62 = vmul.f32 -1.442695, %v992_v46  ;;  %v1087_v45 = vld [vmem:[%s1670_s4 + $0x8] sm:$0xff] }
0x10cd   :  { %1295 = vtanh.f32 %v992_v46  ;;  %v1086_v46 = vld [vmem:[%s1670_s4] sm:$0xff] }
0x10ce   :  { %1297 = vpow2.f32 %v1162_v51 }
0x10cf   :  { %v984_v47 = vpop.f32.mrf.mxu0 }
0x10d2   :  { %v1294_v49 = vpop.eup %1293 }
0x10d3   :  { %v1296_v50 = vpop.eup %1295  ;;  %1043 = vrot.lane.b32.xlu2 %v1294_v49, %s1336_s28 }
0x10d4   :  { %1045 = vrot.lane.b32.xlu1 %v1296_v50, %s1336_s28  ;;  %v1298_v58 = vpop.eup %1297 }
0x10d5   :  { %v999_v54 = vadd.f32 1.0, %v1298_v58 }
0x10d7   :  { %1299 = vrcp.f32 %v999_v54  ;;  %v1012_v6 = vand.u32 2147483648, %v999_v54  ;;  %vm1006_vm1 = vweird.f32 %v999_v54  ;;  %v1010_v8 = vand.u32 2147483647, %v999_v54 }
0x10d8   :  { %1301 = vpow2.f32 %v1163_v62 }
0x10d9   :  { %v1013_v9 = vor.u32 1.1754944e-38, %v1012_v6  ;;  %vm1011_vm3 = vcmp.eq.f32.partialorder %v1010_v8, 8.507059e+37 }
0x10dd   :  { %v1300_v48 = vpop.eup %1299 }
0x10de   :  { %v1002_v1 = vmul.f32 %v1300_v48, %v999_v54  ;;  %v1302_v2 = vpop.eup %1301  ;;  %vm1007_vm9 = vweird.f32 %v1300_v48  ;;  %v1180_v54 = vld [vmem:[#allocation3] ss:$0 sm:$0xff] }
0x10df   :  { %v1000_v5 = vadd.f32 1.0, %v1302_v2  ;;  %vm1008_vm2 = vmor %vm1006_vm1, %vm1007_vm9  ;;  %vm1081_vm9 = vcmask 261127   ;;  %vm1123_vm1 = vcmask 7168  }
0x10e0   :  { %v1003_v15 = vsub.f32 1.0, %v1002_v1 }
0x10e1   :  { %1303 = vrcp.f32 %v1000_v5  ;;  %v1027_v23 = vand.u32 2147483648, %v1000_v5  ;;  %vm1021_vm5 = vweird.f32 %v1000_v5  ;;  %v1025_v25 = vand.u32 2147483647, %v1000_v5 }
0x10e2   :  { %v1004_v12 = vmul.f32 %v1300_v48, %v1003_v15 }
0x10e3   :  { %v1028_v27 = vor.u32 1.1754944e-38, %v1027_v23  ;;  %vm1026_vm7 = vcmp.eq.f32.partialorder %v1025_v25, 8.507059e+37 }
0x10e4   :  { %v1005_v55 = vadd.f32 %v1300_v48, %v1004_v12 }
0x10e6   :  { %v1009_v0 = vsel %vm1008_vm2, %v1300_v48, %v1005_v55 }
0x10e7   :  { %v1593_v52 = vsel %vm1011_vm3, %v1013_v9, %v1009_v0  ;;  %v1304_v18 = vpop.eup %1303 }
0x10e8   :  { %v1017_v19 = vmul.f32 %v1304_v18, %v1000_v5  ;;  %vm1022_vm4 = vweird.f32 %v1304_v18 }
0x10e9   :  { %vm1023_vm6 = vmor %vm1021_vm5, %vm1022_vm4 }
0x10ea   :  { %v1018_v7 = vsub.f32 1.0, %v1017_v19 }
0x10ec   :  { %v1019_v53 = vmul.f32 %v1304_v18, %v1018_v7 }
0x10ee   :  { %v1020_v22 = vadd.f32 %v1304_v18, %v1019_v53 }
0x10f0   :  { %v1024_v26 = vsel %vm1023_vm6, %v1304_v18, %v1020_v22 }
0x10f1   :  { %v1029_v30 = vsel %vm1026_vm7, %v1028_v27, %v1024_v26 }
0x112d   :  { %v1044_v13 = vpop.permute.xlu2 %1043 }
0x112e   :  { %v1049_v14 = vmul.f32 %v1044_v13, %v1593_v52 }
0x1130   :  { %1053 = vrot.lane.b32.xlu1 %v1049_v14, %s1339_s2 }
0x1138   :  { %197 = vrot.lane.b32.xlu1 %v1416_v59, %s1339_s2  ;;  %v1035_v59 = vrot.slane %v1569_v24, 7 }
0x1140   :  { %573 = vrot.lane.b32.xlu1 %v1499_v4, %s1339_s2  ;;  %v1039_v4 = vmul.f32 %v1035_v59, %v1593_v52 }
0x1146   :  { %v1046_v28 = vpop.permute.xlu1 %1045 }
0x1147   :  { %v1050_v16 = vmul.f32 %v1046_v28, %v1029_v30 }
0x1148   :  { %951 = vrot.lane.b32.xlu1 %v1580_v33, %s1339_s2 }
0x1149   :  { %1055 = vrot.lane.b32.xlu0 %v1050_v16, %s1339_s2 }
0x1150   :  { %320 = vrot.lane.b32.xlu1 %v1445_v60, %s1339_s2  ;;  %v1036_v60 = vrot.slane %v1574_v29, 7 }
0x1158   :  { %697 = vrot.lane.b32.xlu1 %v1524_v10, %s1339_s2  ;;  %v1040_v10 = vmul.f32 %v1036_v60, %v1029_v30 }
0x11a2   :  { %v1054_v31 = vpop.permute.xlu1 %1053 }
0x11a3   :  { %v1059_v34 = vadd.f32 %v1054_v31, %v1039_v4 }
0x11a5   :  { %1305 = vtanh.f32 %v1059_v34 }
0x11aa   :  { %v198_v17 = vpop.permute.xlu1 %197 }
0x11ab   :  { %v1306_v35 = vpop.eup %1305  ;;  %203 = vst.msk [vmem:[#allocation2 + $0x8] sm:$0x1] %vm201_vm8, %v198_v17 }
0x11ac   :  { %1065 = vrot.lane.b32.xlu0 %v1306_v35, %s1336_s28 }
0x11b2   :  { %v574_v33 = vpop.permute.xlu1 %573 }
0x11b3   :  { %579 = vst.msk [vmem:[#allocation2 + $0x8] sm:$0x8] %vm577_vm11, %v574_v33 }
0x11b4   :  { %447 = vrot.lane.b32.xlu0 %v1472_v56, %s1339_s2 }
0x11ba   :  { %v952_v24 = vpop.permute.xlu1 %951 }
0x11bb   :  { %v1056_v36 = vpop.permute.xlu0 %1055  ;;  %957 = vst.msk [vmem:[#allocation2 + $0x8] sm:$0x40] %vm955_vm12, %v952_v24 }
0x11bc   :  { %v1060_v37 = vadd.f32 %v1056_v36, %v1040_v10  ;;  %825 = vrot.lane.b32.xlu0 %v1553_v21, %s1339_s2 }
0x11be   :  { %1307 = vtanh.f32 %v1060_v37 }
0x11c2   :  { %v321_v38 = vpop.permute.xlu1 %320 }
0x11c3   :  { %327 = vst.msk [vmem:[#allocation2] sm:$0x2] %vm326_vm13, %v321_v38 }
0x11c4   :  { %v1308_v39 = vpop.eup %1307  ;;  %195 = vrot.lane.b32.xlu0 %v1420_v63, %s1339_s2 }
0x11c5   :  { %1067 = vrot.lane.b32.xlu2 %v1308_v39, %s1336_s28 }
0x11ca   :  { %v698_v56 = vpop.permute.xlu1 %697 }
0x11cb   :  { %704 = vst.msk [vmem:[#allocation2] sm:$0x10] %vm703_vm14, %v698_v56 }
0x11cc   :  { %571 = vrot.lane.b32.xlu0 %v1497_v3, %s1339_s2 }
0x11cd   :  { %322 = vrot.lane.b32.xlu2 %v1443_v57, %s1339_s2 }
0x11d4   :  { %949 = vrot.lane.b32.xlu0 %v1578_v32, %s1339_s2 }
0x11d5   :  { %699 = vrot.lane.b32.xlu2 %v1526_v11, %s1339_s2 }
0x11dd   :  { %445 = vrot.lane.b32.xlu2 %v1470_v61, %s1339_s2 }
0x121e   :  { %v1066_v63 = vpop.permute.xlu0 %1065 }
0x121f   :  { %v1068_v21 = vpop.permute.xlu2 %1067  ;;  %v1071_v29 = vmul.f32 %v1066_v63, %v1593_v52 }
0x1220   :  { %v1072_v40 = vmul.f32 %v1068_v21, %v1029_v30 }
0x1221   :  { %1075 = vrot.lane.b32.xlu1 %v1071_v29, %s1339_s2 }
0x1222   :  { %1077 = vrot.lane.b32.xlu2 %v1072_v40, %s1339_s2 }
0x1226   :  { %v448_v57 = vpop.permute.xlu0 %447 }
0x1227   :  { %v323_v3 = vpop.permute.xlu2 %322  ;;  %453 = vst.msk [vmem:[#allocation2 + $0x8] sm:$0x4] %vm451_vm15, %v448_v57 }
0x1228   :  { %328 = vst.msk [vmem:[#allocation2 + $0x8] sm:$0x2] %vm326_vm13, %v323_v3 }
0x122a   :  { %823 = vrot.lane.b32.xlu2 %v1551_v20, %s1339_s2  ;;  %v1089_v20 = vld [vmem:[%s1670_s4 + $0x18] sm:$0xff] }
0x122b   :  { %1170 = vmatpush.msra.mxu2 %v1089_v20  ;;  %1112 = vmatpush.msra.mxu1 %v1089_v20 }
0x122d   :  { %1171 = vmatpush.msra.mxu2 %v1088_v44  ;;  %1113 = vmatpush.msra.mxu1 %v1088_v44 }
0x122e   :  { %v826_v61 = vpop.permute.xlu0 %825 }
0x122f   :  { %v700_v11 = vpop.permute.xlu2 %699  ;;  %831 = vst.msk [vmem:[#allocation2 + $0x8] sm:$0x20] %vm829_vm0, %v826_v61  ;;  %1172 = vmatpush.msra.mxu2 %v1087_v45  ;;  %1114 = vmatpush.msra.mxu1 %v1087_v45 }
0x1230   :  { %705 = vst.msk [vmem:[#allocation2 + $0x8] sm:$0x10] %vm703_vm14, %v700_v11 }
0x1231   :  { %1173 = vmatpush.msra.mxu2 %v1086_v46  ;;  %1115 = vmatpush.msra.mxu1 %v1086_v46 }
0x1236   :  { %v196_v32 = vpop.permute.xlu0 %195 }
0x1237   :  { %v446_v41 = vpop.permute.xlu2 %445  ;;  %202 = vst.msk [vmem:[#allocation2] sm:$0x1] %vm201_vm8, %v196_v32 }
0x1238   :  { %452 = vst.msk [vmem:[#allocation2] sm:$0x4] %vm451_vm15, %v446_v41 }
0x123e   :  { %v572_v42 = vpop.permute.xlu0 %571 }
0x123f   :  { %578 = vst.msk [vmem:[#allocation2] sm:$0x8] %vm577_vm11, %v572_v42 }
0x1246   :  { %v950_v43 = vpop.permute.xlu0 %949 }
0x1247   :  { %956 = vst.msk [vmem:[#allocation2] sm:$0x40] %vm955_vm12, %v950_v43 }
0x127c   :  { %v1078_v47 = vpop.permute.xlu2 %1077 }
0x127d   :  { %1083 = vst.msk [vmem:[#allocation2 + $0x8] sm:$0x80] %vm1081_vm9, %v1078_v47 }
0x1284   :  { %v824_v49 = vpop.permute.xlu2 %823  ;;  %v1085_v50 = vld [vmem:[#allocation2 + $0x8] sm:$0xff] }
0x1285   :  { %830 = vst.msk [vmem:[#allocation2] sm:$0x20] %vm829_vm0, %v824_v49  ;;  %1165 = vmatmul.msk.f32.vlgmr.msra.gmra.mxu2 %vm96_vm10, %v1085_v50 }
0x1293   :  { %v1076_v51 = vpop.permute.xlu1 %1075 }
0x1294   :  { %1082 = vst.msk [vmem:[#allocation2] sm:$0x80] %vm1081_vm9, %v1076_v51 }
0x129b   :  { %v1084_v58 = vld [vmem:[#allocation2] sm:$0xff] }
0x129c   :  { %1164 = vmatmul.msk.f32.vlgmr.msra.gmra.mxu1 %vm96_vm10, %v1084_v58 }
0x1308   :  { %v1120_v48 = vpop.f32.mrf.mxu2 }
0x1309   :  { %v1121_v62 = vadd.f32 %v1180_v54, %v1120_v48 }
0x130b   :  { %1125 = vst.msk [vmem:[%s1672_s6 + $0x8] sm:$0xff] %vm1123_vm1, %v1121_v62 }
0x1319   :  { %v1117_v1 = vpop.f32.mrf.mxu1 }
0x131a   :  { %v1118_v15 = vadd.f32 %v1180_v54, %v1117_v1 }
0x131c   :  { %1124 = vst.msk [vmem:[%s1672_s6] sm:$0xff] %vm1123_vm1, %v1118_v15 }
0x131d   :  { %1130 = vsyncpa [#allocation5], 1 }

</bundles_post_ra>
